<compile_context>
chip_gen: v7x
topology: tpu7x:2x2x1
jax: 0.10.0
libtpu: 0.0.40
codegen_flags: <defaults>
</compile_context>

<pallas_src>
import jax
import jax.numpy as jnp
from jax.experimental import pallas as pl
from jax.experimental.pallas import tpu as pltpu

TILE_M = 256      # rows of the im2col matrix per grid step (use 512-1024 for big M)
LANE = 128        # pad C_out to a multiple of this for lane-dense output stores
_EPS = 1e-5


def _round_up(x, m):
    return (x + m - 1) // m * m


def _cparams():
    return pltpu.CompilerParams(
        dimension_semantics=("parallel",),
        vmem_limit_bytes=32 * 1024 * 1024,
    )


# ----------------------------- Pallas kernels ------------------------------


def _conv_lrelu_kernel(p_ref, w_ref, y_ref):
    # p_ref: [TILE_M, K] im2col patches; w_ref: [K, C_pad] reshaped conv weight.
    y = jnp.dot(p_ref[...], w_ref[...], preferred_element_type=jnp.float32)
    y_ref[...] = jnp.where(y > 0, y, 0.2 * y)


def _conv_stats_kernel(p_ref, w_ref, y_ref, st_ref):
    # Conv matmul for one M-tile + fused per-channel partial BN statistics.
    y = jnp.dot(p_ref[...], w_ref[...], preferred_element_type=jnp.float32)
    y_ref[...] = y
    ssum = jnp.sum(y, axis=0, keepdims=True)        # [1, C_pad]
    ssq = jnp.sum(y * y, axis=0, keepdims=True)     # [1, C_pad]
    zeros = jnp.zeros((6, y.shape[1]), jnp.float32)
    st_ref[...] = jnp.concatenate([ssum, ssq, zeros], axis=0)[None]   # [1, 8, C_pad]


def _bn_lrelu_kernel(y_ref, s_ref, b_ref, o_ref):
    # Per-channel affine (folded BN) + LeakyReLU(0.2), elementwise over a tile.
    out = y_ref[...] * s_ref[...] + b_ref[...]
    o_ref[...] = jnp.where(out > 0, out, 0.2 * out)


# --------------------------- pallas_call wrappers ---------------------------


def conv_lrelu(patches, w_mat, tm):
    Mp, K = patches.shape
    _, Cp = w_mat.shape
    m_tiles = Mp // tm
    return pl.pallas_call(
        _conv_lrelu_kernel,
        out_shape=jax.ShapeDtypeStruct((Mp, Cp), jnp.float32),
        grid=(m_tiles,),
        in_specs=[
            pl.BlockSpec((tm, K), lambda i: (i, 0)),
            pl.BlockSpec((K, Cp), lambda i: (0, 0)),
        ],
        out_specs=pl.BlockSpec((tm, Cp), lambda i: (i, 0)),
        compiler_params=_cparams(),
    )(patches, w_mat)


def conv_stats(patches, w_mat, tm):
    Mp, K = patches.shape
    _, Cp = w_mat.shape
    m_tiles = Mp // tm
    return pl.pallas_call(
        _conv_stats_kernel,
        out_shape=(
            jax.ShapeDtypeStruct((Mp, Cp), jnp.float32),          # raw conv output
            jax.ShapeDtypeStruct((m_tiles, 8, Cp), jnp.float32),  # per-tile (sum, sumsq)
        ),
        grid=(m_tiles,),
        in_specs=[
            pl.BlockSpec((tm, K), lambda i: (i, 0)),
            pl.BlockSpec((K, Cp), lambda i: (0, 0)),
        ],
        out_specs=(
            pl.BlockSpec((tm, Cp), lambda i: (i, 0)),
            pl.BlockSpec((1, 8, Cp), lambda i: (i, 0, 0)),
        ),
        compiler_params=_cparams(),
    )(patches, w_mat)


def bn_lrelu(y, scale, shift, tm):
    Mp, Cp = y.shape
    m_tiles = Mp // tm
    return pl.pallas_call(
        _bn_lrelu_kernel,
        out_shape=jax.ShapeDtypeStruct((Mp, Cp), jnp.float32),
        grid=(m_tiles,),
        in_specs=[
            pl.BlockSpec((tm, Cp), lambda i: (i, 0)),
            pl.BlockSpec((1, Cp), lambda i: (0, 0)),
            pl.BlockSpec((1, Cp), lambda i: (0, 0)),
        ],
        out_specs=pl.BlockSpec((tm, Cp), lambda i: (i, 0)),
        compiler_params=_cparams(),
    )(y, scale, shift)


# ------------------------------- JAX glue ----------------------------------


def im2col_nhwc(x, ksize=4, stride=2, pad=1):
    """NHWC patches in [M, 16*C] layout, K ordered (kh, kw, c). No transposes."""
    N, H, W, C = x.shape
    Ho = (H + 2 * pad - ksize) // stride + 1
    Wo = (W + 2 * pad - ksize) // stride + 1
    xp = jnp.pad(x, ((0, 0), (pad, pad), (pad, pad), (0, 0)))
    cols = []
    for kh in range(ksize):
        for kw in range(ksize):
            cols.append(
                xp[:, kh:kh + stride * Ho:stride, kw:kw + stride * Wo:stride, :]
            )
    p = jnp.concatenate(cols, axis=-1)               # [N, Ho, Wo, 16*C]
    return p.reshape(N * Ho * Wo, ksize * ksize * C), (N, Ho, Wo)


def conv_block(x_nhwc, w_oihw, gamma=None, beta=None):
    """Conv(4,2,1,bias=False) [+ BatchNorm] + LeakyReLU(0.2). NHWC in/out."""
    patches, (N, Ho, Wo) = im2col_nhwc(x_nhwc)
    M, K = patches.shape
    C_out = w_oihw.shape[0]
    Cp = _round_up(C_out, LANE)
    tm = min(TILE_M, _round_up(M, 8))
    Mp = _round_up(M, tm)
    if Mp != M:
        # zero rows contribute 0 to both sum and sum_sq -> stats stay exact.
        patches = jnp.pad(patches, ((0, Mp - M), (0, 0)))

    # OIHW -> [K, C_out] with K ordered (kh, kw, c), then lane-pad C_out.
    w_mat = w_oihw.transpose(2, 3, 1, 0).reshape(K, C_out)
    if Cp != C_out:
        w_mat = jnp.pad(w_mat, ((0, 0), (0, Cp - C_out)))

    if gamma is None:
        y = conv_lrelu(patches, w_mat, tm)
    else:
        y, partial = conv_stats(patches, w_mat, tm)
        total = jnp.sum(partial, axis=0)                       # [8, Cp]
        mean = total[0] / M
        var = jnp.maximum(total[1] / M - mean * mean, 0.0)     # biased variance
        g = jnp.pad(gamma, ((0, 0), (0, Cp - C_out)), constant_values=1.0)
        b = jnp.pad(beta, ((0, 0), (0, Cp - C_out)))
        scale = g * jax.lax.rsqrt(var + _EPS)                  # [1, Cp]
        shift = b - mean[None, :] * scale                      # [1, Cp]
        y = bn_lrelu(y, scale, shift, tm)

    y = y[:M, :C_out]
    return y.reshape(N, Ho, Wo, C_out)


def init_params(key, ndf=8):
    keys = jax.random.split(key, 10)
    chans = [3, ndf, ndf * 2, ndf * 4, ndf * 8]
    params = {}
    for i in range(4):
        cin, cout = chans[i], chans[i + 1]
        std = 1.0 / jnp.sqrt(cin * 16.0)
        params[f"w{i + 1}"] = (
            jax.random.normal(keys[i], (cout, cin, 4, 4), jnp.float32) * std
        )
    for j, i in enumerate((2, 3, 4)):
        c = chans[i]
        params[f"g{i}"] = 1.0 + 0.1 * jax.random.normal(keys[4 + j], (1, c), jnp.float32)
        params[f"b{i}"] = 0.1 * jax.random.normal(keys[7 + j], (1, c), jnp.float32)
    return params


@jax.jit
def stage1_d_forward(image_nchw, params):
    x = image_nchw.astype(jnp.float32).transpose(0, 2, 3, 1)          # NCHW -> NHWC
    x = conv_block(x, params["w1"])                                   # 3    -> ndf
    x = conv_block(x, params["w2"], params["g2"], params["b2"])       # ndf  -> 2ndf
    x = conv_block(x, params["w3"], params["g3"], params["b3"])       # 2ndf -> 4ndf
    x = conv_block(x, params["w4"], params["g4"], params["b4"])       # 4ndf -> 8ndf
    return x.transpose(0, 3, 1, 2)    # img_embedding, NCHW: [N, 8*ndf, H/16, W/16]


# ------------------------- pure-JAX reference check -------------------------


@jax.jit
def _reference_forward(image_nchw, params):
    def conv(x, w):
        return jax.lax.conv_general_dilated(
            x, w, window_strides=(2, 2), padding=((1, 1), (1, 1)),
            dimension_numbers=("NCHW", "OIHW", "NCHW"))

    def lrelu(x):
        return jnp.where(x > 0, x, 0.2 * x)

    def bn(x, g, b):
        mean = x.mean(axis=(0, 2, 3), keepdims=True)
        var = ((x - mean) ** 2).mean(axis=(0, 2, 3), keepdims=True)
        xhat = (x - mean) * jax.lax.rsqrt(var + _EPS)
        return xhat * g.reshape(1, -1, 1, 1) + b.reshape(1, -1, 1, 1)

    x = image_nchw.astype(jnp.float32)
    x = lrelu(conv(x, params["w1"]))
    x = lrelu(bn(conv(x, params["w2"]), params["g2"], params["b2"]))
    x = lrelu(bn(conv(x, params["w3"]), params["g3"], params["b3"]))
    x = lrelu(bn(conv(x, params["w4"]), params["g4"], params["b4"]))
    return x


if __name__ == "__main__":
    key = jax.random.PRNGKey(0)
    k_img, k_par = jax.random.split(key)

    ndf = 8  # cfg.GAN.DF_DIM (small synthetic setting)
    image = jax.random.normal(k_img, (2, 3, 32, 32), jnp.float32)  # NCHW
    params = init_params(k_par, ndf=ndf)

    out = jax.block_until_ready(stage1_d_forward(image, params))

    assert out.shape == (2, ndf * 8, 2, 2), out.shape
    assert jnp.all(jnp.isfinite(out))

    ref = jax.block_until_ready(_reference_forward(image, params))
    err = float(jnp.max(jnp.abs(out - ref)))
    assert err < 5e-2, f"max abs err vs reference: {err}"

    print("KERNEL_OK")
</pallas_src>

<mosaic_0001>
module attributes {stable_mosaic.version = 11 : i64} {
  func.func @_conv_lrelu_kernel(%arg0: i32, %arg1: memref<256x48xf32, #tpu.memory_space<vmem>>, %arg2: memref<48x128xf32, #tpu.memory_space<vmem>>, %arg3: memref<256x128xf32, #tpu.memory_space<vmem>>) attributes {dimension_semantics = [#tpu.dimension_semantics<parallel>], iteration_bounds = array<i64: 2>, scalar_prefetch = 0 : i64, scratch_operands = 0 : i64, tpu.core_type = #tpu.core_type<tc>, window_params = [{transform_indices = @transform_0, window_bounds = array<i64: 256, 48>}, {pipeline_mode = #tpu.pipeline_mode<synchronous>, transform_indices = @transform_1, window_bounds = array<i64: 48, 128>}, {transform_indices = @transform_2, window_bounds = array<i64: 256, 128>}]} {
    %c0 = arith.constant 0 : index
    %c0_0 = arith.constant 0 : index
    %0 = vector.load %arg1[%c0, %c0_0] : memref<256x48xf32, #tpu.memory_space<vmem>>, vector<256x48xf32>
    %c0_1 = arith.constant 0 : index
    %c0_2 = arith.constant 0 : index
    %1 = vector.load %arg2[%c0_1, %c0_2] : memref<48x128xf32, #tpu.memory_space<vmem>>, vector<48x128xf32>
    %cst = arith.constant dense<0.000000e+00> : vector<256x128xf32>
    %2 = tpu.matmul %0, %1, %cst {dimension_numbers = #tpu.dot_dimension_numbers<[1], [0], [0], [1], [0, 0, 1, 1], [], []>} : vector<256x48xf32>, vector<48x128xf32>, vector<256x128xf32> -> vector<256x128xf32>
    %cst_3 = arith.constant 0.000000e+00 : f32
    %3 = vector.broadcast %cst_3 : f32 to vector<256x128xf32>
    %4 = arith.cmpf ogt, %2, %3 : vector<256x128xf32>
    %cst_4 = arith.constant 2.000000e-01 : f32
    %5 = vector.broadcast %cst_4 : f32 to vector<256x128xf32>
    %6 = arith.mulf %5, %2 : vector<256x128xf32>
    %7 = arith.select %4, %2, %6 : vector<256x128xi1>, vector<256x128xf32>
    %c0_5 = arith.constant 0 : index
    %c0_6 = arith.constant 0 : index
    %8 = vector.load %arg3[%c0_5, %c0_6] : memref<256x128xf32, #tpu.memory_space<vmem>>, vector<256x128xf32>
    tpu.vector_store %arg3[%c0_5, %c0_6], %7 {strides = array<i32>} : memref<256x128xf32, #tpu.memory_space<vmem>>, vector<256x128xf32>,
    return
  }
  func.func @transform_0(%arg0: i32) -> (i32, i32) {
    %c0_i32 = arith.constant 0 : i32
    %c0_i32_0 = arith.constant 0 : i32
    return %arg0, %c0_i32 : i32, i32
  }
  func.func @transform_1(%arg0: i32) -> (i32, i32) {
    %c0_i32 = arith.constant 0 : i32
    %c0_i32_0 = arith.constant 0 : i32
    %c0_i32_1 = arith.constant 0 : i32
    return %c0_i32, %c0_i32_0 : i32, i32
  }
  func.func @transform_2(%arg0: i32) -> (i32, i32) {
    %c0_i32 = arith.constant 0 : i32
    %c0_i32_0 = arith.constant 0 : i32
    return %arg0, %c0_i32 : i32, i32
  }
}

module attributes {stable_mosaic.version = 11 : i64} {
  func.func @_conv_stats_kernel(%arg0: i32, %arg1: memref<128x128xf32, #tpu.memory_space<vmem>>, %arg2: memref<128x128xf32, #tpu.memory_space<vmem>>, %arg3: memref<128x128xf32, #tpu.memory_space<vmem>>, %arg4: memref<1x8x128xf32, #tpu.memory_space<vmem>>) attributes {dimension_semantics = [#tpu.dimension_semantics<parallel>], iteration_bounds = array<i64: 1>, scalar_prefetch = 0 : i64, scratch_operands = 0 : i64, tpu.core_type = #tpu.core_type<tc>, window_params = [{transform_indices = @transform_0, window_bounds = array<i64: 128, 128>}, {pipeline_mode = #tpu.pipeline_mode<synchronous>, transform_indices = @transform_1, window_bounds = array<i64: 128, 128>}, {transform_indices = @transform_2, window_bounds = array<i64: 128, 128>}, {transform_indices = @transform_3, window_bounds = array<i64: 1, 8, 128>}]} {
    %c0 = arith.constant 0 : index
    %c0_0 = arith.constant 0 : index
    %0 = vector.load %arg1[%c0, %c0_0] : memref<128x128xf32, #tpu.memory_space<vmem>>, vector<128x128xf32>
    %c0_1 = arith.constant 0 : index
    %c0_2 = arith.constant 0 : index
    %1 = vector.load %arg2[%c0_1, %c0_2] : memref<128x128xf32, #tpu.memory_space<vmem>>, vector<128x128xf32>
    %cst = arith.constant dense<0.000000e+00> : vector<128x128xf32>
    %2 = tpu.matmul %0, %1, %cst {dimension_numbers = #tpu.dot_dimension_numbers<[1], [0], [0], [1], [0, 0, 1, 1], [], []>} : vector<128x128xf32>, vector<128x128xf32>, vector<128x128xf32> -> vector<128x128xf32>
    %c0_3 = arith.constant 0 : index
    %c0_4 = arith.constant 0 : index
    %3 = vector.load %arg3[%c0_3, %c0_4] : memref<128x128xf32, #tpu.memory_space<vmem>>, vector<128x128xf32>
    tpu.vector_store %arg3[%c0_3, %c0_4], %2 {strides = array<i32>} : memref<128x128xf32, #tpu.memory_space<vmem>>, vector<128x128xf32>,
    %cst_5 = arith.constant dense<0.000000e+00> : vector<128xf32>
    %4 = vector.multi_reduction <add>, %2, %cst_5 [0] : vector<128x128xf32> to vector<128xf32>
    %5 = vector.shape_cast %4 : vector<128xf32> to vector<1x128xf32>
    %6 = arith.mulf %2, %2 : vector<128x128xf32>
    %cst_6 = arith.constant dense<0.000000e+00> : vector<128xf32>
    %7 = vector.multi_reduction <add>, %6, %cst_6 [0] : vector<128x128xf32> to vector<128xf32>
    %8 = vector.shape_cast %7 : vector<128xf32> to vector<1x128xf32>
    %cst_7 = arith.constant 0.000000e+00 : f32
    %9 = vector.broadcast %cst_7 : f32 to vector<6x128xf32>
    %10 = tpu.concatenate %5, %8, %9 in 0 : vector<1x128xf32>, vector<1x128xf32>, vector<6x128xf32> -> vector<8x128xf32>
    %11 = vector.shape_cast %10 : vector<8x128xf32> to vector<1x8x128xf32>
    %c0_8 = arith.constant 0 : index
    %c0_9 = arith.constant 0 : index
    %c0_10 = arith.constant 0 : index
    %12 = vector.load %arg4[%c0_8, %c0_9, %c0_10] : memref<1x8x128xf32, #tpu.memory_space<vmem>>, vector<1x8x128xf32>
    tpu.vector_store %arg4[%c0_8, %c0_9, %c0_10], %11 {strides = array<i32>} : memref<1x8x128xf32, #tpu.memory_space<vmem>>, vector<1x8x128xf32>,
    return
  }
  func.func @transform_0(%arg0: i32) -> (i32, i32) {
    %c0_i32 = arith.constant 0 : i32
    %c0_i32_0 = arith.constant 0 : i32
    return %arg0, %c0_i32 : i32, i32
  }
  func.func @transform_1(%arg0: i32) -> (i32, i32) {
    %c0_i32 = arith.constant 0 : i32
    %c0_i32_0 = arith.constant 0 : i32
    %c0_i32_1 = arith.constant 0 : i32
    return %c0_i32, %c0_i32_0 : i32, i32
  }
  func.func @transform_2(%arg0: i32) -> (i32, i32) {
    %c0_i32 = arith.constant 0 : i32
    %c0_i32_0 = arith.constant 0 : i32
    return %arg0, %c0_i32 : i32, i32
  }
  func.func @transform_3(%arg0: i32) -> (i32, i32, i32) {
    %c0_i32 = arith.constant 0 : i32
    %c0_i32_0 = arith.constant 0 : i32
    %c0_i32_1 = arith.constant 0 : i32
    return %arg0, %c0_i32, %c0_i32_0 : i32, i32, i32
  }
}

module attributes {stable_mosaic.version = 11 : i64} {
  func.func @_bn_lrelu_kernel(%arg0: i32, %arg1: memref<128x128xf32, #tpu.memory_space<vmem>>, %arg2: memref<1x128xf32, #tpu.memory_space<vmem>>, %arg3: memref<1x128xf32, #tpu.memory_space<vmem>>, %arg4: memref<128x128xf32, #tpu.memory_space<vmem>>) attributes {dimension_semantics = [#tpu.dimension_semantics<parallel>], iteration_bounds = array<i64: 1>, scalar_prefetch = 0 : i64, scratch_operands = 0 : i64, tpu.core_type = #tpu.core_type<tc>, window_params = [{transform_indices = @transform_0, window_bounds = array<i64: 128, 128>}, {pipeline_mode = #tpu.pipeline_mode<synchronous>, transform_indices = @transform_1, window_bounds = array<i64: 1, 128>}, {pipeline_mode = #tpu.pipeline_mode<synchronous>, transform_indices = @transform_2, window_bounds = array<i64: 1, 128>}, {transform_indices = @transform_3, window_bounds = array<i64: 128, 128>}]} {
    %c0 = arith.constant 0 : index
    %c0_0 = arith.constant 0 : index
    %0 = vector.load %arg1[%c0, %c0_0] : memref<128x128xf32, #tpu.memory_space<vmem>>, vector<128x128xf32>
    %c0_1 = arith.constant 0 : index
    %c0_2 = arith.constant 0 : index
    %1 = vector.load %arg2[%c0_1, %c0_2] : memref<1x128xf32, #tpu.memory_space<vmem>>, vector<1x128xf32>
    %2 = vector.broadcast %1 : vector<1x128xf32> to vector<128x128xf32>
    %3 = arith.mulf %0, %2 : vector<128x128xf32>
    %c0_3 = arith.constant 0 : index
    %c0_4 = arith.constant 0 : index
    %4 = vector.load %arg3[%c0_3, %c0_4] : memref<1x128xf32, #tpu.memory_space<vmem>>, vector<1x128xf32>
    %5 = vector.broadcast %4 : vector<1x128xf32> to vector<128x128xf32>
    %6 = arith.addf %3, %5 : vector<128x128xf32>
    %cst = arith.constant 0.000000e+00 : f32
    %7 = vector.broadcast %cst : f32 to vector<128x128xf32>
    %8 = arith.cmpf ogt, %6, %7 : vector<128x128xf32>
    %cst_5 = arith.constant 2.000000e-01 : f32
    %9 = vector.broadcast %cst_5 : f32 to vector<128x128xf32>
    %10 = arith.mulf %9, %6 : vector<128x128xf32>
    %11 = arith.select %8, %6, %10 : vector<128x128xi1>, vector<128x128xf32>
    %c0_6 = arith.constant 0 : index
    %c0_7 = arith.constant 0 : index
    %12 = vector.load %arg4[%c0_6, %c0_7] : memref<128x128xf32, #tpu.memory_space<vmem>>, vector<128x128xf32>
    tpu.vector_store %arg4[%c0_6, %c0_7], %11 {strides = array<i32>} : memref<128x128xf32, #tpu.memory_space<vmem>>, vector<128x128xf32>,
    return
  }
  func.func @transform_0(%arg0: i32) -> (i32, i32) {
    %c0_i32 = arith.constant 0 : i32
    %c0_i32_0 = arith.constant 0 : i32
    return %arg0, %c0_i32 : i32, i32
  }
  func.func @transform_1(%arg0: i32) -> (i32, i32) {
    %c0_i32 = arith.constant 0 : i32
    %c0_i32_0 = arith.constant 0 : i32
    %c0_i32_1 = arith.constant 0 : i32
    return %c0_i32, %c0_i32_0 : i32, i32
  }
  func.func @transform_2(%arg0: i32) -> (i32, i32) {
    %c0_i32 = arith.constant 0 : i32
    %c0_i32_0 = arith.constant 0 : i32
    %c0_i32_1 = arith.constant 0 : i32
    return %c0_i32, %c0_i32_0 : i32, i32
  }
  func.func @transform_3(%arg0: i32) -> (i32, i32) {
    %c0_i32 = arith.constant 0 : i32
    %c0_i32_0 = arith.constant 0 : i32
    return %arg0, %c0_i32 : i32, i32
  }
}

module attributes {stable_mosaic.version = 11 : i64} {
  func.func @_conv_stats_kernel(%arg0: i32, %arg1: memref<32x256xf32, #tpu.memory_space<vmem>>, %arg2: memref<256x128xf32, #tpu.memory_space<vmem>>, %arg3: memref<32x128xf32, #tpu.memory_space<vmem>>, %arg4: memref<1x8x128xf32, #tpu.memory_space<vmem>>) attributes {dimension_semantics = [#tpu.dimension_semantics<parallel>], iteration_bounds = array<i64: 1>, scalar_prefetch = 0 : i64, scratch_operands = 0 : i64, tpu.core_type = #tpu.core_type<tc>, window_params = [{transform_indices = @transform_0, window_bounds = array<i64: 32, 256>}, {pipeline_mode = #tpu.pipeline_mode<synchronous>, transform_indices = @transform_1, window_bounds = array<i64: 256, 128>}, {transform_indices = @transform_2, window_bounds = array<i64: 32, 128>}, {transform_indices = @transform_3, window_bounds = array<i64: 1, 8, 128>}]} {
    %c0 = arith.constant 0 : index
    %c0_0 = arith.constant 0 : index
    %0 = vector.load %arg1[%c0, %c0_0] : memref<32x256xf32, #tpu.memory_space<vmem>>, vector<32x256xf32>
    %c0_1 = arith.constant 0 : index
    %c0_2 = arith.constant 0 : index
    %1 = vector.load %arg2[%c0_1, %c0_2] : memref<256x128xf32, #tpu.memory_space<vmem>>, vector<256x128xf32>
    %cst = arith.constant dense<0.000000e+00> : vector<32x128xf32>
    %2 = tpu.matmul %0, %1, %cst {dimension_numbers = #tpu.dot_dimension_numbers<[1], [0], [0], [1], [0, 0, 1, 1], [], []>} : vector<32x256xf32>, vector<256x128xf32>, vector<32x128xf32> -> vector<32x128xf32>
    %c0_3 = arith.constant 0 : index
    %c0_4 = arith.constant 0 : index
    %3 = vector.load %arg3[%c0_3, %c0_4] : memref<32x128xf32, #tpu.memory_space<vmem>>, vector<32x128xf32>
    tpu.vector_store %arg3[%c0_3, %c0_4], %2 {strides = array<i32>} : memref<32x128xf32, #tpu.memory_space<vmem>>, vector<32x128xf32>,
    %cst_5 = arith.constant dense<0.000000e+00> : vector<128xf32>
    %4 = vector.multi_reduction <add>, %2, %cst_5 [0] : vector<32x128xf32> to vector<128xf32>
    %5 = vector.shape_cast %4 : vector<128xf32> to vector<1x128xf32>
    %6 = arith.mulf %2, %2 : vector<32x128xf32>
    %cst_6 = arith.constant dense<0.000000e+00> : vector<128xf32>
    %7 = vector.multi_reduction <add>, %6, %cst_6 [0] : vector<32x128xf32> to vector<128xf32>
    %8 = vector.shape_cast %7 : vector<128xf32> to vector<1x128xf32>
    %cst_7 = arith.constant 0.000000e+00 : f32
    %9 = vector.broadcast %cst_7 : f32 to vector<6x128xf32>
    %10 = tpu.concatenate %5, %8, %9 in 0 : vector<1x128xf32>, vector<1x128xf32>, vector<6x128xf32> -> vector<8x128xf32>
    %11 = vector.shape_cast %10 : vector<8x128xf32> to vector<1x8x128xf32>
    %c0_8 = arith.constant 0 : index
    %c0_9 = arith.constant 0 : index
    %c0_10 = arith.constant 0 : index
    %12 = vector.load %arg4[%c0_8, %c0_9, %c0_10] : memref<1x8x128xf32, #tpu.memory_space<vmem>>, vector<1x8x128xf32>
    tpu.vector_store %arg4[%c0_8, %c0_9, %c0_10], %11 {strides = array<i32>} : memref<1x8x128xf32, #tpu.memory_space<vmem>>, vector<1x8x128xf32>,
    return
  }
  func.func @transform_0(%arg0: i32) -> (i32, i32) {
    %c0_i32 = arith.constant 0 : i32
    %c0_i32_0 = arith.constant 0 : i32
    return %arg0, %c0_i32 : i32, i32
  }
  func.func @transform_1(%arg0: i32) -> (i32, i32) {
    %c0_i32 = arith.constant 0 : i32
    %c0_i32_0 = arith.constant 0 : i32
    %c0_i32_1 = arith.constant 0 : i32
    return %c0_i32, %c0_i32_0 : i32, i32
  }
  func.func @transform_2(%arg0: i32) -> (i32, i32) {
    %c0_i32 = arith.constant 0 : i32
    %c0_i32_0 = arith.constant 0 : i32
    return %arg0, %c0_i32 : i32, i32
  }
  func.func @transform_3(%arg0: i32) -> (i32, i32, i32) {
    %c0_i32 = arith.constant 0 : i32
    %c0_i32_0 = arith.constant 0 : i32
    %c0_i32_1 = arith.constant 0 : i32
    return %arg0, %c0_i32, %c0_i32_0 : i32, i32, i32
  }
}

module attributes {stable_mosaic.version = 11 : i64} {
  func.func @_bn_lrelu_kernel(%arg0: i32, %arg1: memref<32x128xf32, #tpu.memory_space<vmem>>, %arg2: memref<1x128xf32, #tpu.memory_space<vmem>>, %arg3: memref<1x128xf32, #tpu.memory_space<vmem>>, %arg4: memref<32x128xf32, #tpu.memory_space<vmem>>) attributes {dimension_semantics = [#tpu.dimension_semantics<parallel>], iteration_bounds = array<i64: 1>, scalar_prefetch = 0 : i64, scratch_operands = 0 : i64, tpu.core_type = #tpu.core_type<tc>, window_params = [{transform_indices = @transform_0, window_bounds = array<i64: 32, 128>}, {pipeline_mode = #tpu.pipeline_mode<synchronous>, transform_indices = @transform_1, window_bounds = array<i64: 1, 128>}, {pipeline_mode = #tpu.pipeline_mode<synchronous>, transform_indices = @transform_2, window_bounds = array<i64: 1, 128>}, {transform_indices = @transform_3, window_bounds = array<i64: 32, 128>}]} {
    %c0 = arith.constant 0 : index
    %c0_0 = arith.constant 0 : index
    %0 = vector.load %arg1[%c0, %c0_0] : memref<32x128xf32, #tpu.memory_space<vmem>>, vector<32x128xf32>
    %c0_1 = arith.constant 0 : index
    %c0_2 = arith.constant 0 : index
    %1 = vector.load %arg2[%c0_1, %c0_2] : memref<1x128xf32, #tpu.memory_space<vmem>>, vector<1x128xf32>
    %2 = vector.broadcast %1 : vector<1x128xf32> to vector<32x128xf32>
    %3 = arith.mulf %0, %2 : vector<32x128xf32>
    %c0_3 = arith.constant 0 : index
    %c0_4 = arith.constant 0 : index
    %4 = vector.load %arg3[%c0_3, %c0_4] : memref<1x128xf32, #tpu.memory_space<vmem>>, vector<1x128xf32>
    %5 = vector.broadcast %4 : vector<1x128xf32> to vector<32x128xf32>
    %6 = arith.addf %3, %5 : vector<32x128xf32>
    %cst = arith.constant 0.000000e+00 : f32
    %7 = vector.broadcast %cst : f32 to vector<32x128xf32>
    %8 = arith.cmpf ogt, %6, %7 : vector<32x128xf32>
    %cst_5 = arith.constant 2.000000e-01 : f32
    %9 = vector.broadcast %cst_5 : f32 to vector<32x128xf32>
    %10 = arith.mulf %9, %6 : vector<32x128xf32>
    %11 = arith.select %8, %6, %10 : vector<32x128xi1>, vector<32x128xf32>
    %c0_6 = arith.constant 0 : index
    %c0_7 = arith.constant 0 : index
    %12 = vector.load %arg4[%c0_6, %c0_7] : memref<32x128xf32, #tpu.memory_space<vmem>>, vector<32x128xf32>
    tpu.vector_store %arg4[%c0_6, %c0_7], %11 {strides = array<i32>} : memref<32x128xf32, #tpu.memory_space<vmem>>, vector<32x128xf32>,
    return
  }
  func.func @transform_0(%arg0: i32) -> (i32, i32) {
    %c0_i32 = arith.constant 0 : i32
    %c0_i32_0 = arith.constant 0 : i32
    return %arg0, %c0_i32 : i32, i32
  }
  func.func @transform_1(%arg0: i32) -> (i32, i32) {
    %c0_i32 = arith.constant 0 : i32
    %c0_i32_0 = arith.constant 0 : i32
    %c0_i32_1 = arith.constant 0 : i32
    return %c0_i32, %c0_i32_0 : i32, i32
  }
  func.func @transform_2(%arg0: i32) -> (i32, i32) {
    %c0_i32 = arith.constant 0 : i32
    %c0_i32_0 = arith.constant 0 : i32
    %c0_i32_1 = arith.constant 0 : i32
    return %c0_i32, %c0_i32_0 : i32, i32
  }
  func.func @transform_3(%arg0: i32) -> (i32, i32) {
    %c0_i32 = arith.constant 0 : i32
    %c0_i32_0 = arith.constant 0 : i32
    return %arg0, %c0_i32 : i32, i32
  }
}

module attributes {stable_mosaic.version = 11 : i64} {
  func.func @_bn_lrelu_kernel(%arg0: i32, %arg1: memref<8x128xf32, #tpu.memory_space<vmem>>, %arg2: memref<1x128xf32, #tpu.memory_space<vmem>>, %arg3: memref<1x128xf32, #tpu.memory_space<vmem>>, %arg4: memref<8x128xf32, #tpu.memory_space<vmem>>) attributes {dimension_semantics = [#tpu.dimension_semantics<parallel>], iteration_bounds = array<i64: 1>, scalar_prefetch = 0 : i64, scratch_operands = 0 : i64, tpu.core_type = #tpu.core_type<tc>, window_params = [{transform_indices = @transform_0, window_bounds = array<i64: 8, 128>}, {pipeline_mode = #tpu.pipeline_mode<synchronous>, transform_indices = @transform_1, window_bounds = array<i64: 1, 128>}, {pipeline_mode = #tpu.pipeline_mode<synchronous>, transform_indices = @transform_2, window_bounds = array<i64: 1, 128>}, {transform_indices = @transform_3, window_bounds = array<i64: 8, 128>}]} {
    %c0 = arith.constant 0 : index
    %c0_0 = arith.constant 0 : index
    %0 = vector.load %arg1[%c0, %c0_0] : memref<8x128xf32, #tpu.memory_space<vmem>>, vector<8x128xf32>
    %c0_1 = arith.constant 0 : index
    %c0_2 = arith.constant 0 : index
    %1 = vector.load %arg2[%c0_1, %c0_2] : memref<1x128xf32, #tpu.memory_space<vmem>>, vector<1x128xf32>
    %2 = vector.broadcast %1 : vector<1x128xf32> to vector<8x128xf32>
    %3 = arith.mulf %0, %2 : vector<8x128xf32>
    %c0_3 = arith.constant 0 : index
    %c0_4 = arith.constant 0 : index
    %4 = vector.load %arg3[%c0_3, %c0_4] : memref<1x128xf32, #tpu.memory_space<vmem>>, vector<1x128xf32>
    %5 = vector.broadcast %4 : vector<1x128xf32> to vector<8x128xf32>
    %6 = arith.addf %3, %5 : vector<8x128xf32>
    %cst = arith.constant 0.000000e+00 : f32
    %7 = vector.broadcast %cst : f32 to vector<8x128xf32>
    %8 = arith.cmpf ogt, %6, %7 : vector<8x128xf32>
    %cst_5 = arith.constant 2.000000e-01 : f32
    %9 = vector.broadcast %cst_5 : f32 to vector<8x128xf32>
    %10 = arith.mulf %9, %6 : vector<8x128xf32>
    %11 = arith.select %8, %6, %10 : vector<8x128xi1>, vector<8x128xf32>
    %c0_6 = arith.constant 0 : index
    %c0_7 = arith.constant 0 : index
    %12 = vector.load %arg4[%c0_6, %c0_7] : memref<8x128xf32, #tpu.memory_space<vmem>>, vector<8x128xf32>
    tpu.vector_store %arg4[%c0_6, %c0_7], %11 {strides = array<i32>} : memref<8x128xf32, #tpu.memory_space<vmem>>, vector<8x128xf32>,
    return
  }
  func.func @transform_0(%arg0: i32) -> (i32, i32) {
    %c0_i32 = arith.constant 0 : i32
    %c0_i32_0 = arith.constant 0 : i32
    return %arg0, %c0_i32 : i32, i32
  }
  func.func @transform_1(%arg0: i32) -> (i32, i32) {
    %c0_i32 = arith.constant 0 : i32
    %c0_i32_0 = arith.constant 0 : i32
    %c0_i32_1 = arith.constant 0 : i32
    return %c0_i32, %c0_i32_0 : i32, i32
  }
  func.func @transform_2(%arg0: i32) -> (i32, i32) {
    %c0_i32 = arith.constant 0 : i32
    %c0_i32_0 = arith.constant 0 : i32
    %c0_i32_1 = arith.constant 0 : i32
    return %c0_i32, %c0_i32_0 : i32, i32
  }
  func.func @transform_3(%arg0: i32) -> (i32, i32) {
    %c0_i32 = arith.constant 0 : i32
    %c0_i32_0 = arith.constant 0 : i32
    return %arg0, %c0_i32 : i32, i32
  }
}

module attributes {stable_mosaic.version = 11 : i64} {
  func.func @_conv_stats_kernel(%arg0: i32, %arg1: memref<8x512xf32, #tpu.memory_space<vmem>>, %arg2: memref<512x128xf32, #tpu.memory_space<vmem>>, %arg3: memref<8x128xf32, #tpu.memory_space<vmem>>, %arg4: memref<1x8x128xf32, #tpu.memory_space<vmem>>) attributes {dimension_semantics = [#tpu.dimension_semantics<parallel>], iteration_bounds = array<i64: 1>, scalar_prefetch = 0 : i64, scratch_operands = 0 : i64, tpu.core_type = #tpu.core_type<tc>, window_params = [{transform_indices = @transform_0, window_bounds = array<i64: 8, 512>}, {pipeline_mode = #tpu.pipeline_mode<synchronous>, transform_indices = @transform_1, window_bounds = array<i64: 512, 128>}, {transform_indices = @transform_2, window_bounds = array<i64: 8, 128>}, {transform_indices = @transform_3, window_bounds = array<i64: 1, 8, 128>}]} {
    %c0 = arith.constant 0 : index
    %c0_0 = arith.constant 0 : index
    %0 = vector.load %arg1[%c0, %c0_0] : memref<8x512xf32, #tpu.memory_space<vmem>>, vector<8x512xf32>
    %c0_1 = arith.constant 0 : index
    %c0_2 = arith.constant 0 : index
    %1 = vector.load %arg2[%c0_1, %c0_2] : memref<512x128xf32, #tpu.memory_space<vmem>>, vector<512x128xf32>
    %cst = arith.constant dense<0.000000e+00> : vector<8x128xf32>
    %2 = tpu.matmul %0, %1, %cst {dimension_numbers = #tpu.dot_dimension_numbers<[1], [0], [0], [1], [0, 0, 1, 1], [], []>} : vector<8x512xf32>, vector<512x128xf32>, vector<8x128xf32> -> vector<8x128xf32>
    %c0_3 = arith.constant 0 : index
    %c0_4 = arith.constant 0 : index
    %3 = vector.load %arg3[%c0_3, %c0_4] : memref<8x128xf32, #tpu.memory_space<vmem>>, vector<8x128xf32>
    tpu.vector_store %arg3[%c0_3, %c0_4], %2 {strides = array<i32>} : memref<8x128xf32, #tpu.memory_space<vmem>>, vector<8x128xf32>,
    %cst_5 = arith.constant dense<0.000000e+00> : vector<128xf32>
    %4 = vector.multi_reduction <add>, %2, %cst_5 [0] : vector<8x128xf32> to vector<128xf32>
    %5 = vector.shape_cast %4 : vector<128xf32> to vector<1x128xf32>
    %6 = arith.mulf %2, %2 : vector<8x128xf32>
    %cst_6 = arith.constant dense<0.000000e+00> : vector<128xf32>
    %7 = vector.multi_reduction <add>, %6, %cst_6 [0] : vector<8x128xf32> to vector<128xf32>
    %8 = vector.shape_cast %7 : vector<128xf32> to vector<1x128xf32>
    %cst_7 = arith.constant 0.000000e+00 : f32
    %9 = vector.broadcast %cst_7 : f32 to vector<6x128xf32>
    %10 = tpu.concatenate %5, %8, %9 in 0 : vector<1x128xf32>, vector<1x128xf32>, vector<6x128xf32> -> vector<8x128xf32>
    %11 = vector.shape_cast %10 : vector<8x128xf32> to vector<1x8x128xf32>
    %c0_8 = arith.constant 0 : index
    %c0_9 = arith.constant 0 : index
    %c0_10 = arith.constant 0 : index
    %12 = vector.load %arg4[%c0_8, %c0_9, %c0_10] : memref<1x8x128xf32, #tpu.memory_space<vmem>>, vector<1x8x128xf32>
    tpu.vector_store %arg4[%c0_8, %c0_9, %c0_10], %11 {strides = array<i32>} : memref<1x8x128xf32, #tpu.memory_space<vmem>>, vector<1x8x128xf32>,
    return
  }
  func.func @transform_0(%arg0: i32) -> (i32, i32) {
    %c0_i32 = arith.constant 0 : i32
    %c0_i32_0 = arith.constant 0 : i32
    return %arg0, %c0_i32 : i32, i32
  }
  func.func @transform_1(%arg0: i32) -> (i32, i32) {
    %c0_i32 = arith.constant 0 : i32
    %c0_i32_0 = arith.constant 0 : i32
    %c0_i32_1 = arith.constant 0 : i32
    return %c0_i32, %c0_i32_0 : i32, i32
  }
  func.func @transform_2(%arg0: i32) -> (i32, i32) {
    %c0_i32 = arith.constant 0 : i32
    %c0_i32_0 = arith.constant 0 : i32
    return %arg0, %c0_i32 : i32, i32
  }
  func.func @transform_3(%arg0: i32) -> (i32, i32, i32) {
    %c0_i32 = arith.constant 0 : i32
    %c0_i32_0 = arith.constant 0 : i32
    %c0_i32_1 = arith.constant 0 : i32
    return %arg0, %c0_i32, %c0_i32_0 : i32, i32, i32
  }
}

</mosaic_0001>

<bundles_post_ra>
// kernel: stage1_d_forward.7
= control target key start
LH: loop header
LB: loop body
LE: loop exit
PB: predicated region body
PF: predicated region fallthrough
CT: control target
= control target key end

     0   :  { %s881_s9 = smov 0   ;;  %s1023_s0 = inlined_call_operand.vmem [shape: f32[512,48], index: 0, kind: input, shape index: {}]   ;;  %s1024_s1 = inlined_call_operand.vmem [shape: f32[48,128], index: 1, kind: input, shape index: {}]   ;;  %s1025_s2 = inlined_call_operand.vmem [shape: f32[512,128], index: 2, kind: output, shape index: {}]  }
   0x1 LB: > { %s691_s10 = sadd.s32 4294967295, %s864_s9   ;;  %p695_p0 = scmp.ge.s32.totalorder %s864_s9, 1  ;;  %s864_s9 = sphi %s881_s9, %s12_s9  }
   0x2   : > { %p113_p1 = scmp.lt.s32.totalorder %s864_s9, 3 }
   0x4   : > { %p114_p2 = pnand %p695_p0, %p113_p1 }
   0x5   : > { %v179_v0 = vld [vmem:[%s1024_s1] sm:$0xff] (!%p114_p2)  ;;  %v180_v1 = vld [vmem:[%s1024_s1 + $0x8] sm:$0xff] (!%p114_p2)  ;;  %v181_v2 = vld [vmem:[%s1024_s1 + $0x10] sm:$0xff] (!%p114_p2)  ;;  %s696_s17 = sshll.u32 (!%p114_p2), %s691_s10, 5  ;;  %vm185_vm0 = vcmask (!%p114_p2), 392192  }
   0x6   : > { %117 = sbr.rel (%p114_p2) target bundleno = 266 (0x10a), region = 28  ;;  %v832_v3 = vpack.c.bf16 (!%p114_p2), %v180_v1, %v179_v0  ;;  %v182_v4 = vld [vmem:[%s1024_s1 + $0x18] sm:$0xff] (!%p114_p2)  ;;  %p136_p3 = scmp.lt.s32.totalorder (!%p114_p2), %s696_s17, 63  ;;  %v183_v6 = vld [vmem:[%s1024_s1 + $0x20] sm:$0xff] (!%p114_p2)  ;;  %v184_v7 = vld [vmem:[%s1024_s1 + $0x28] sm:$0xff] (!%p114_p2) }
   0x7   : > { %v836_v5 = vpack.c.bf16 (!%p114_p2), %v182_v4, %v181_v2  ;;  %v840_v8 = vpack.c.bf16 (!%p114_p2), %v184_v7, %v183_v6 }
   0x8   : > { %833 = vmatprep.subr.bf16.mxu0 (!%p114_p2), %v832_v3  ;;  %844 = vmatprep.subr.bf16.mxu1 (!%p114_p2), %v832_v3 }
   0x9   : > { %835 = vmatpush3.bf16.msra.mxu0 (!%p114_p2), %v832_v3  ;;  %847 = vmatpush3.bf16.msra.mxu1 (!%p114_p2), %v832_v3 }
   0xa   : > { %837 = vmatprep.subr.bf16.mxu0 (!%p114_p2), %v836_v5  ;;  %845 = vmatprep.subr.bf16.mxu1 (!%p114_p2), %v836_v5 }
   0xd   : > { %s1027_s17 = smov (!%p136_p3, %s696_s17), 63  ;;  %839 = vmatpush3.bf16.msra.mxu0 %v836_v5  ;;  %848 = vmatpush3.bf16.msra.mxu1 %v836_v5 }
   0xe   : > { %s697_s24 = sshll.u32 %s1027_s17, 3  ;;  %841 = vmatprep.subr.bf16.mxu0 %v840_v8  ;;  %846 = vmatprep.subr.bf16.mxu1 %v840_v8 }
   0xf   : > { %s915_s27 = scalar_lea.vmem %s1023_s0, %s697_s24  ;;  %s986_s30 = scalar_lea.vmem %s1025_s2, %s697_s24 }
  0x10   : > { %v147_v9 = vld [vmem:[%s915_s27] sm:$0xff]  ;;  %v148_v11 = vld [vmem:[%s915_s27 + $0x8] sm:$0xff]  ;;  %v149_v13 = vld [vmem:[%s915_s27 + $0x10] sm:$0xff] }
  0x11   : > { %v163_v10 = vld [vmem:[%s915_s27 + $0x80] sm:$0xff]  ;;  %784 = vmatprep.mubr.msk.f32.mxu0 %vm185_vm0, %v147_v9  ;;  %843 = vmatpush3.bf16.msra.mxu0 %v840_v8  ;;  %v164_v12 = vld [vmem:[%s915_s27 + $0x88] sm:$0xff]  ;;  %v165_v14 = vld [vmem:[%s915_s27 + $0x90] sm:$0xff] }
  0x12   : > { %808 = vmatprep.mubr.msk.f32.mxu1 %vm185_vm0, %v163_v10  ;;  %849 = vmatpush3.bf16.msra.mxu1 %v840_v8  ;;  %v150_v15 = vld [vmem:[%s915_s27 + $0x18] sm:$0xff]  ;;  %v151_v17 = vld [vmem:[%s915_s27 + $0x20] sm:$0xff]  ;;  %v152_v19 = vld [vmem:[%s915_s27 + $0x28] sm:$0xff] }
  0x13   : > { %v166_v16 = vld [vmem:[%s915_s27 + $0x98] sm:$0xff]  ;;  %v167_v18 = vld [vmem:[%s915_s27 + $0xa0] sm:$0xff]  ;;  %v168_v20 = vld [vmem:[%s915_s27 + $0xa8] sm:$0xff] }
  0x14   : > { %785 = vmatmul.mubr.msk.f32.vlgmr.msra.gmra.mrb[0].mxu0 %vm185_vm0, %v148_v11  ;;  %v153_v21 = vld [vmem:[%s915_s27 + $0x30] sm:$0xff]  ;;  %v154_v23 = vld [vmem:[%s915_s27 + $0x38] sm:$0xff]  ;;  %v155_v25 = vld [vmem:[%s915_s27 + $0x40] sm:$0xff] }
  0x15   : > { %809 = vmatmul.mubr.msk.f32.vlgmr.msra.gmra.mrb[0].mxu1 %vm185_vm0, %v164_v12  ;;  %787 = vmatprep.mubr.msk.f32.mxu0 %vm185_vm0, %v149_v13  ;;  %v169_v22 = vld [vmem:[%s915_s27 + $0xb0] sm:$0xff]  ;;  %v170_v24 = vld [vmem:[%s915_s27 + $0xb8] sm:$0xff]  ;;  %v171_v26 = vld [vmem:[%s915_s27 + $0xc0] sm:$0xff] }
  0x16   : > { %811 = vmatprep.mubr.msk.f32.mxu1 %vm185_vm0, %v165_v14  ;;  %v156_v27 = vld [vmem:[%s915_s27 + $0x48] sm:$0xff]  ;;  %v157_v29 = vld [vmem:[%s915_s27 + $0x50] sm:$0xff]  ;;  %v158_v31 = vld [vmem:[%s915_s27 + $0x58] sm:$0xff] }
  0x17   : > { %v172_v28 = vld [vmem:[%s915_s27 + $0xc8] sm:$0xff]  ;;  %v173_v30 = vld [vmem:[%s915_s27 + $0xd0] sm:$0xff]  ;;  %v174_v32 = vld [vmem:[%s915_s27 + $0xd8] sm:$0xff] }
  0x18   : > { %788 = vmatmul.mubr.msk.f32.gmra.mrb[2].mxu0 %vm185_vm0, %v150_v15  ;;  %v159_v33 = vld [vmem:[%s915_s27 + $0x60] sm:$0xff]  ;;  %v160_v35 = vld [vmem:[%s915_s27 + $0x68] sm:$0xff]  ;;  %v161_v37 = vld [vmem:[%s915_s27 + $0x70] sm:$0xff] }
  0x19   : > { %812 = vmatmul.mubr.msk.f32.gmra.mrb[2].mxu1 %vm185_vm0, %v166_v16  ;;  %790 = vmatprep.mubr.msk.f32.mxu0 %vm185_vm0, %v151_v17  ;;  %v175_v34 = vld [vmem:[%s915_s27 + $0xe0] sm:$0xff]  ;;  %v176_v36 = vld [vmem:[%s915_s27 + $0xe8] sm:$0xff]  ;;  %v177_v38 = vld [vmem:[%s915_s27 + $0xf0] sm:$0xff] }
  0x1a   : > { %814 = vmatprep.mubr.msk.f32.mxu1 %vm185_vm0, %v167_v18  ;;  %v162_v39 = vld [vmem:[%s915_s27 + $0x78] sm:$0xff] }
  0x1b   : > { %v178_v40 = vld [vmem:[%s915_s27 + $0xf8] sm:$0xff] }
  0x1c   : > { %791 = vmatmul.mubr.msk.f32.gmra.mrb[4].mxu0 %vm185_vm0, %v152_v19 }
  0x1d   : > { %815 = vmatmul.mubr.msk.f32.gmra.mrb[4].mxu1 %vm185_vm0, %v168_v20  ;;  %793 = vmatprep.mubr.msk.f32.mxu0 %vm185_vm0, %v153_v21 }
  0x1e   : > { %817 = vmatprep.mubr.msk.f32.mxu1 %vm185_vm0, %v169_v22 }
  0x20   : > { %794 = vmatmul.mubr.msk.f32.gmra.mrb[6].mxu0 %vm185_vm0, %v154_v23 }
  0x21   : > { %818 = vmatmul.mubr.msk.f32.gmra.mrb[6].mxu1 %vm185_vm0, %v170_v24  ;;  %796 = vmatprep.mubr.msk.f32.mxu0 %vm185_vm0, %v155_v25 }
  0x22   : > { %820 = vmatprep.mubr.msk.f32.mxu1 %vm185_vm0, %v171_v26 }
  0x24   : > { %797 = vmatmul.mubr.msk.f32.gmra.mrb[8].mxu0 %vm185_vm0, %v156_v27 }
  0x25   : > { %821 = vmatmul.mubr.msk.f32.gmra.mrb[8].mxu1 %vm185_vm0, %v172_v28  ;;  %799 = vmatprep.mubr.msk.f32.mxu0 %vm185_vm0, %v157_v29 }
  0x26   : > { %823 = vmatprep.mubr.msk.f32.mxu1 %vm185_vm0, %v173_v30 }
  0x28   : > { %800 = vmatmul.mubr.msk.f32.gmra.mrb[10].mxu0 %vm185_vm0, %v158_v31 }
  0x29   : > { %824 = vmatmul.mubr.msk.f32.gmra.mrb[10].mxu1 %vm185_vm0, %v174_v32  ;;  %802 = vmatprep.mubr.msk.f32.mxu0 %vm185_vm0, %v159_v33 }
  0x2a   : > { %826 = vmatprep.mubr.msk.f32.mxu1 %vm185_vm0, %v175_v34 }
  0x2c   : > { %803 = vmatmul.mubr.msk.f32.gmra.mrb[12].mxu0 %vm185_vm0, %v160_v35 }
  0x2d   : > { %827 = vmatmul.mubr.msk.f32.gmra.mrb[12].mxu1 %vm185_vm0, %v176_v36  ;;  %805 = vmatprep.mubr.msk.f32.mxu0 %vm185_vm0, %v161_v37 }
  0x2e   : > { %829 = vmatprep.mubr.msk.f32.mxu1 %vm185_vm0, %v177_v38 }
  0x30   : > { %806 = vmatmul.mubr.msk.f32.gmra.mrb[14].mxu0 %vm185_vm0, %v162_v39 }
  0x31   : > { %830 = vmatmul.mubr.msk.f32.gmra.mrb[14].mxu1 %vm185_vm0, %v178_v40 }
  0xe7   : > { %v786_v41 = vpop.f32.mrb[0].mxu0 }
  0xe8   : > { %v810_v42 = vpop.f32.mrb[0].mxu1  ;;  %vm508_vm1 = vcmp.gt.f32.partialorder %v786_v41, 0.0  ;;  %v540_v43 = vmul.f32 0.2, %v786_v41  ;;  %v348_v45 = vpop.f32.mrb[1].mxu0 }
  0xe9   : > { %vm524_vm2 = vcmp.gt.f32.partialorder %v810_v42, 0.0  ;;  %v556_v44 = vmul.f32 0.2, %v810_v42  ;;  %v428_v46 = vpop.f32.mrb[1].mxu1  ;;  %vm507_vm3 = vcmp.gt.f32.partialorder %v348_v45, 0.0 }
  0xea   : > { %v572_v47 = vsel %vm508_vm1, %v786_v41, %v540_v43  ;;  %v539_v49 = vmul.f32 0.2, %v348_v45  ;;  %vm523_vm4 = vcmp.gt.f32.partialorder %v428_v46, 0.0  ;;  %v555_v50 = vmul.f32 0.2, %v428_v46 }
  0xeb   : > { %v588_v48 = vsel %vm524_vm2, %v810_v42, %v556_v44  ;;  %604 = vst [vmem:[%s986_s30 + $0x8] sm:$0xff] %v572_v47  ;;  %v789_v51 = vpop.f32.mrb[2].mxu0 }
  0xec   : > { %620 = vst [vmem:[%s986_s30 + $0x88] sm:$0xff] %v588_v48  ;;  %v813_v52 = vpop.f32.mrb[2].mxu1  ;;  %v571_v53 = vsel %vm507_vm3, %v348_v45, %v539_v49  ;;  %vm510_vm5 = vcmp.gt.f32.partialorder %v789_v51, 0.0  ;;  %v542_v54 = vmul.f32 0.2, %v789_v51  ;;  %v358_v55 = vpop.f32.mrb[3].mxu0  ;;  %v587_v57 = vsel %vm523_vm4, %v428_v46, %v555_v50 }
  0xed   : > { %vm526_vm6 = vcmp.gt.f32.partialorder %v813_v52, 0.0  ;;  %v438_v56 = vpop.f32.mrb[3].mxu1  ;;  %603 = vst [vmem:[%s986_s30] sm:$0xff] %v571_v53  ;;  %v558_v58 = vmul.f32 0.2, %v813_v52  ;;  %vm509_vm7 = vcmp.gt.f32.partialorder %v358_v55, 0.0  ;;  %619 = vst [vmem:[%s986_s30 + $0x80] sm:$0xff] %v587_v57 }
  0xee   : > { %v541_v59 = vmul.f32 0.2, %v358_v55  ;;  %v574_v60 = vsel %vm510_vm5, %v789_v51, %v542_v54  ;;  %vm525_vm8 = vcmp.gt.f32.partialorder %v438_v56, 0.0  ;;  %v557_v61 = vmul.f32 0.2, %v438_v56 }
  0xef   : > { %606 = vst [vmem:[%s986_s30 + $0x18] sm:$0xff] %v574_v60  ;;  %v590_v62 = vsel %vm526_vm6, %v813_v52, %v558_v58  ;;  %v792_v0 = vpop.f32.mrb[4].mxu0 }
  0xf0   : > { %v573_v63 = vsel %vm509_vm7, %v358_v55, %v541_v59  ;;  %v816_v1 = vpop.f32.mrb[4].mxu1  ;;  %622 = vst [vmem:[%s986_s30 + $0x98] sm:$0xff] %v590_v62  ;;  %v589_v2 = vsel %vm525_vm8, %v438_v56, %v557_v61  ;;  %vm512_vm9 = vcmp.gt.f32.partialorder %v792_v0, 0.0  ;;  %v544_v3 = vmul.f32 0.2, %v792_v0  ;;  %v368_v4 = vpop.f32.mrb[5].mxu0 }
  0xf1   : > { %605 = vst [vmem:[%s986_s30 + $0x10] sm:$0xff] %v573_v63  ;;  %vm528_vm10 = vcmp.gt.f32.partialorder %v816_v1, 0.0  ;;  %v448_v5 = vpop.f32.mrb[5].mxu1  ;;  %621 = vst [vmem:[%s986_s30 + $0x90] sm:$0xff] %v589_v2  ;;  %v560_v6 = vmul.f32 0.2, %v816_v1 }
  0xf2   : > { %vm511_vm11 = vcmp.gt.f32.partialorder %v368_v4, 0.0  ;;  %v543_v7 = vmul.f32 0.2, %v368_v4  ;;  %vm527_vm12 = vcmp.gt.f32.partialorder %v448_v5, 0.0  ;;  %v576_v8 = vsel %vm512_vm9, %v792_v0, %v544_v3 }
  0xf3   : > { %v559_v9 = vmul.f32 0.2, %v448_v5  ;;  %608 = vst [vmem:[%s986_s30 + $0x28] sm:$0xff] %v576_v8  ;;  %v592_v10 = vsel %vm528_vm10, %v816_v1, %v560_v6  ;;  %v795_v12 = vpop.f32.mrb[6].mxu0 }
  0xf4   : > { %v575_v11 = vsel %vm511_vm11, %v368_v4, %v543_v7  ;;  %v819_v13 = vpop.f32.mrb[6].mxu1  ;;  %624 = vst [vmem:[%s986_s30 + $0xa8] sm:$0xff] %v592_v10  ;;  %vm514_vm13 = vcmp.gt.f32.partialorder %v795_v12, 0.0  ;;  %v546_v15 = vmul.f32 0.2, %v795_v12  ;;  %v378_v16 = vpop.f32.mrb[7].mxu0 }
  0xf5   : > { %607 = vst [vmem:[%s986_s30 + $0x20] sm:$0xff] %v575_v11  ;;  %v591_v14 = vsel %vm527_vm12, %v448_v5, %v559_v9  ;;  %vm530_vm14 = vcmp.gt.f32.partialorder %v819_v13, 0.0  ;;  %v458_v17 = vpop.f32.mrb[7].mxu1  ;;  %v562_v18 = vmul.f32 0.2, %v819_v13  ;;  %vm513_vm15 = vcmp.gt.f32.partialorder %v378_v16, 0.0 }
  0xf6   : > { %623 = vst [vmem:[%s986_s30 + $0xa0] sm:$0xff] %v591_v14  ;;  %v545_v19 = vmul.f32 0.2, %v378_v16  ;;  %vm529_vm0 = vcmp.gt.f32.partialorder %v458_v17, 0.0  ;;  %v578_v20 = vsel %vm514_vm13, %v795_v12, %v546_v15  ;;  %v561_v21 = vmul.f32 0.2, %v458_v17 }
  0xf7   : > { %610 = vst [vmem:[%s986_s30 + $0x38] sm:$0xff] %v578_v20  ;;  %v594_v22 = vsel %vm530_vm14, %v819_v13, %v562_v18  ;;  %v798_v24 = vpop.f32.mrb[8].mxu0 }
  0xf8   : > { %v577_v23 = vsel %vm513_vm15, %v378_v16, %v545_v19  ;;  %v822_v25 = vpop.f32.mrb[8].mxu1  ;;  %626 = vst [vmem:[%s986_s30 + $0xb8] sm:$0xff] %v594_v22  ;;  %v593_v26 = vsel %vm529_vm0, %v458_v17, %v561_v21  ;;  %vm516_vm1 = vcmp.gt.f32.partialorder %v798_v24, 0.0  ;;  %v548_v27 = vmul.f32 0.2, %v798_v24  ;;  %v388_v28 = vpop.f32.mrb[9].mxu0 }
  0xf9   : > { %609 = vst [vmem:[%s986_s30 + $0x30] sm:$0xff] %v577_v23  ;;  %vm532_vm2 = vcmp.gt.f32.partialorder %v822_v25, 0.0  ;;  %v468_v29 = vpop.f32.mrb[9].mxu1  ;;  %625 = vst [vmem:[%s986_s30 + $0xb0] sm:$0xff] %v593_v26  ;;  %v564_v30 = vmul.f32 0.2, %v822_v25 }
  0xfa   : > { %vm515_vm3 = vcmp.gt.f32.partialorder %v388_v28, 0.0  ;;  %v547_v31 = vmul.f32 0.2, %v388_v28  ;;  %vm531_vm4 = vcmp.gt.f32.partialorder %v468_v29, 0.0  ;;  %v580_v32 = vsel %vm516_vm1, %v798_v24, %v548_v27 }
  0xfb   : > { %v563_v33 = vmul.f32 0.2, %v468_v29  ;;  %612 = vst [vmem:[%s986_s30 + $0x48] sm:$0xff] %v580_v32  ;;  %v596_v34 = vsel %vm532_vm2, %v822_v25, %v564_v30  ;;  %v801_v36 = vpop.f32.mrb[10].mxu0 }
  0xfc   : > { %v579_v35 = vsel %vm515_vm3, %v388_v28, %v547_v31  ;;  %v825_v37 = vpop.f32.mrb[10].mxu1  ;;  %628 = vst [vmem:[%s986_s30 + $0xc8] sm:$0xff] %v596_v34  ;;  %vm518_vm5 = vcmp.gt.f32.partialorder %v801_v36, 0.0  ;;  %v550_v39 = vmul.f32 0.2, %v801_v36  ;;  %v398_v40 = vpop.f32.mrb[11].mxu0 }
  0xfd   : > { %611 = vst [vmem:[%s986_s30 + $0x40] sm:$0xff] %v579_v35  ;;  %v595_v38 = vsel %vm531_vm4, %v468_v29, %v563_v33  ;;  %vm534_vm6 = vcmp.gt.f32.partialorder %v825_v37, 0.0  ;;  %v478_v41 = vpop.f32.mrb[11].mxu1  ;;  %v566_v42 = vmul.f32 0.2, %v825_v37  ;;  %vm517_vm7 = vcmp.gt.f32.partialorder %v398_v40, 0.0 }
  0xfe   : > { %627 = vst [vmem:[%s986_s30 + $0xc0] sm:$0xff] %v595_v38  ;;  %v549_v43 = vmul.f32 0.2, %v398_v40  ;;  %vm533_vm8 = vcmp.gt.f32.partialorder %v478_v41, 0.0  ;;  %v582_v44 = vsel %vm518_vm5, %v801_v36, %v550_v39  ;;  %v565_v45 = vmul.f32 0.2, %v478_v41 }
  0xff   : > { %614 = vst [vmem:[%s986_s30 + $0x58] sm:$0xff] %v582_v44  ;;  %v598_v46 = vsel %vm534_vm6, %v825_v37, %v566_v42  ;;  %v804_v48 = vpop.f32.mrb[12].mxu0 }
 0x100   : > { %v581_v47 = vsel %vm517_vm7, %v398_v40, %v549_v43  ;;  %v828_v49 = vpop.f32.mrb[12].mxu1  ;;  %630 = vst [vmem:[%s986_s30 + $0xd8] sm:$0xff] %v598_v46  ;;  %v597_v50 = vsel %vm533_vm8, %v478_v41, %v565_v45  ;;  %vm520_vm9 = vcmp.gt.f32.partialorder %v804_v48, 0.0  ;;  %v552_v51 = vmul.f32 0.2, %v804_v48  ;;  %v408_v52 = vpop.f32.mrb[13].mxu0 }
 0x101   : > { %613 = vst [vmem:[%s986_s30 + $0x50] sm:$0xff] %v581_v47  ;;  %vm536_vm10 = vcmp.gt.f32.partialorder %v828_v49, 0.0  ;;  %v488_v53 = vpop.f32.mrb[13].mxu1  ;;  %629 = vst [vmem:[%s986_s30 + $0xd0] sm:$0xff] %v597_v50  ;;  %v568_v54 = vmul.f32 0.2, %v828_v49 }
 0x102   : > { %vm519_vm11 = vcmp.gt.f32.partialorder %v408_v52, 0.0  ;;  %v551_v55 = vmul.f32 0.2, %v408_v52  ;;  %vm535_vm12 = vcmp.gt.f32.partialorder %v488_v53, 0.0  ;;  %v584_v56 = vsel %vm520_vm9, %v804_v48, %v552_v51 }
 0x103   : > { %v567_v57 = vmul.f32 0.2, %v488_v53  ;;  %616 = vst [vmem:[%s986_s30 + $0x68] sm:$0xff] %v584_v56  ;;  %v600_v58 = vsel %vm536_vm10, %v828_v49, %v568_v54  ;;  %v807_v60 = vpop.f32.mrb[14].mxu0 }
 0x104   : > { %v583_v59 = vsel %vm519_vm11, %v408_v52, %v551_v55  ;;  %v831_v61 = vpop.f32.mrb[14].mxu1  ;;  %632 = vst [vmem:[%s986_s30 + $0xe8] sm:$0xff] %v600_v58  ;;  %vm522_vm13 = vcmp.gt.f32.partialorder %v807_v60, 0.0  ;;  %v554_v63 = vmul.f32 0.2, %v807_v60  ;;  %v418_v0 = vpop.f32.mrb[15].mxu0 }
 0x105   : > { %615 = vst [vmem:[%s986_s30 + $0x60] sm:$0xff] %v583_v59  ;;  %v599_v62 = vsel %vm535_vm12, %v488_v53, %v567_v57  ;;  %vm538_vm14 = vcmp.gt.f32.partialorder %v831_v61, 0.0  ;;  %v498_v1 = vpop.f32.mrb[15].mxu1  ;;  %v570_v2 = vmul.f32 0.2, %v831_v61  ;;  %vm521_vm15 = vcmp.gt.f32.partialorder %v418_v0, 0.0 }
 0x106   : > { %631 = vst [vmem:[%s986_s30 + $0xe0] sm:$0xff] %v599_v62  ;;  %v553_v3 = vmul.f32 0.2, %v418_v0  ;;  %vm537_vm0 = vcmp.gt.f32.partialorder %v498_v1, 0.0  ;;  %v586_v4 = vsel %vm522_vm13, %v807_v60, %v554_v63  ;;  %v569_v5 = vmul.f32 0.2, %v498_v1 }
 0x107   : > { %618 = vst [vmem:[%s986_s30 + $0x78] sm:$0xff] %v586_v4  ;;  %v602_v6 = vsel %vm538_vm14, %v831_v61, %v570_v2 }
 0x108   : > { %v585_v7 = vsel %vm521_vm15, %v418_v0, %v553_v3  ;;  %634 = vst [vmem:[%s986_s30 + $0xf8] sm:$0xff] %v602_v6  ;;  %v601_v8 = vsel %vm537_vm0, %v498_v1, %v569_v5 }
 0x109   : > { %617 = vst [vmem:[%s986_s30 + $0x70] sm:$0xff] %v585_v7  ;;  %633 = vst [vmem:[%s986_s30 + $0xf0] sm:$0xff] %v601_v8 }
 0x10a PF: > { %s12_s9 = sadd.s32 1, %s864_s9  }
 0x10b   : > { %p9_p4 = scmp.ge.s32.totalorder %s12_s9, 4  }
 0x10d   :  { %11 = sbr.rel (!%p9_p4) target bundleno = 1 (0x1), region = 58 }

// kernel: stage1_d_forward.8
= control target key start
LH: loop header
LB: loop body
LE: loop exit
PB: predicated region body
PF: predicated region fallthrough
CT: control target
= control target key end

     0   :  { %vm264_vm0 = vcmask 1040384   ;;  %vm266_vm1 = vcmask 1041408   ;;  %s580_s1 = inlined_call_operand.vmem [shape: f32[128,128], index: 1, kind: input, shape index: {}]   ;;  %s581_s0 = inlined_call_operand.vmem [shape: f32[128,128], index: 0, kind: input, shape index: {}]   ;;  %s582_s2 = inlined_call_operand.vmem [shape: f32[128,128], index: 2, kind: output, shape index: {0}]   ;;  %s583_s3 = inlined_call_operand.vmem [shape: f32[1,8,128], index: 3, kind: output, shape index: {1}]  }
   0x1   :  { %v29_v0 = vld [vmem:[%s580_s1] sm:$0xff]  ;;  %v30_v1 = vld [vmem:[%s580_s1 + $0x8] sm:$0xff]  ;;  %v31_v2 = vld [vmem:[%s580_s1 + $0x10] sm:$0xff] }
   0x2   :  { %v365_v3 = vpack.c.bf16 %v30_v1, %v29_v0  ;;  %v32_v4 = vld [vmem:[%s580_s1 + $0x18] sm:$0xff]  ;;  %v33_v6 = vld [vmem:[%s580_s1 + $0x20] sm:$0xff]  ;;  %v34_v7 = vld [vmem:[%s580_s1 + $0x28] sm:$0xff] }
   0x3   :  { %v369_v5 = vpack.c.bf16 %v32_v4, %v31_v2  ;;  %v373_v8 = vpack.c.bf16 %v34_v7, %v33_v6  ;;  %v13_v9 = vld [vmem:[%s581_s0] sm:$0xff]  ;;  %v35_v10 = vld [vmem:[%s580_s1 + $0x30] sm:$0xff]  ;;  %v36_v11 = vld [vmem:[%s580_s1 + $0x38] sm:$0xff] }
   0x4   :  { %366 = vmatprep.subr.bf16.mxu0 %v365_v3  ;;  %397 = vmatprep.subr.bf16.mxu1 %v365_v3  ;;  %v21_v12 = vld [vmem:[%s581_s0 + $0x40] sm:$0xff]  ;;  %v377_v13 = vpack.c.bf16 %v36_v11, %v35_v10  ;;  %v38_v15 = vld [vmem:[%s580_s1 + $0x48] sm:$0xff]  ;;  %v39_v17 = vld [vmem:[%s580_s1 + $0x50] sm:$0xff] }
   0x5   :  { %368 = vmatpush3.bf16.msra.mxu0 %v365_v3  ;;  %405 = vmatpush3.bf16.msra.mxu1 %v365_v3  ;;  %v37_v14 = vld [vmem:[%s580_s1 + $0x40] sm:$0xff]  ;;  %v40_v18 = vld [vmem:[%s580_s1 + $0x58] sm:$0xff]  ;;  %v42_v21 = vld [vmem:[%s580_s1 + $0x68] sm:$0xff] }
   0x6   :  { %370 = vmatprep.subr.bf16.mxu0 %v369_v5  ;;  %398 = vmatprep.subr.bf16.mxu1 %v369_v5  ;;  %v381_v16 = vpack.c.bf16 %v38_v15, %v37_v14  ;;  %v385_v19 = vpack.c.bf16 %v40_v18, %v39_v17  ;;  %v41_v20 = vld [vmem:[%s580_s1 + $0x60] sm:$0xff]  ;;  %v43_v23 = vld [vmem:[%s580_s1 + $0x70] sm:$0xff]  ;;  %v44_v24 = vld [vmem:[%s580_s1 + $0x78] sm:$0xff] }
   0x7   :  { %341 = vmatprep.mubr.f32.mxu0 %v13_v9  ;;  %353 = vmatprep.mubr.f32.mxu1 %v21_v12  ;;  %v389_v22 = vpack.c.bf16 %v42_v21, %v41_v20  ;;  %v393_v25 = vpack.c.bf16 %v44_v24, %v43_v23  ;;  %v14_v26 = vld [vmem:[%s581_s0 + $0x8] sm:$0xff]  ;;  %v15_v28 = vld [vmem:[%s581_s0 + $0x10] sm:$0xff]  ;;  %v16_v30 = vld [vmem:[%s581_s0 + $0x18] sm:$0xff] }
   0x8   :  { %v22_v27 = vld [vmem:[%s581_s0 + $0x48] sm:$0xff]  ;;  %v23_v29 = vld [vmem:[%s581_s0 + $0x50] sm:$0xff]  ;;  %v24_v31 = vld [vmem:[%s581_s0 + $0x58] sm:$0xff] }
   0x9   :  { %372 = vmatpush3.bf16.msra.mxu0 %v369_v5  ;;  %406 = vmatpush3.bf16.msra.mxu1 %v369_v5  ;;  %v17_v32 = vld [vmem:[%s581_s0 + $0x20] sm:$0xff]  ;;  %v18_v34 = vld [vmem:[%s581_s0 + $0x28] sm:$0xff]  ;;  %v19_v36 = vld [vmem:[%s581_s0 + $0x30] sm:$0xff] }
   0xa   :  { %374 = vmatprep.subr.bf16.mxu0 %v373_v8  ;;  %399 = vmatprep.subr.bf16.mxu1 %v373_v8  ;;  %v25_v33 = vld [vmem:[%s581_s0 + $0x60] sm:$0xff]  ;;  %v26_v35 = vld [vmem:[%s581_s0 + $0x68] sm:$0xff]  ;;  %v27_v37 = vld [vmem:[%s581_s0 + $0x70] sm:$0xff] }
   0xb   :  { %v20_v38 = vld [vmem:[%s581_s0 + $0x38] sm:$0xff] }
   0xc   :  { %v28_v39 = vld [vmem:[%s581_s0 + $0x78] sm:$0xff] }
   0xd   :  { %376 = vmatpush3.bf16.msra.mxu0 %v373_v8  ;;  %407 = vmatpush3.bf16.msra.mxu1 %v373_v8 }
   0xe   :  { %378 = vmatprep.subr.bf16.mxu0 %v377_v13  ;;  %400 = vmatprep.subr.bf16.mxu1 %v377_v13 }
  0x11   :  { %380 = vmatpush3.bf16.msra.mxu0 %v377_v13  ;;  %408 = vmatpush3.bf16.msra.mxu1 %v377_v13 }
  0x12   :  { %382 = vmatprep.subr.bf16.mxu0 %v381_v16  ;;  %401 = vmatprep.subr.bf16.mxu1 %v381_v16 }
  0x15   :  { %384 = vmatpush3.bf16.msra.mxu0 %v381_v16  ;;  %409 = vmatpush3.bf16.msra.mxu1 %v381_v16 }
  0x16   :  { %386 = vmatprep.subr.bf16.mxu0 %v385_v19  ;;  %402 = vmatprep.subr.bf16.mxu1 %v385_v19 }
  0x19   :  { %388 = vmatpush3.bf16.msra.mxu0 %v385_v19  ;;  %410 = vmatpush3.bf16.msra.mxu1 %v385_v19 }
  0x1a   :  { %390 = vmatprep.subr.bf16.mxu0 %v389_v22  ;;  %403 = vmatprep.subr.bf16.mxu1 %v389_v22 }
  0x1d   :  { %392 = vmatpush3.bf16.msra.mxu0 %v389_v22  ;;  %411 = vmatpush3.bf16.msra.mxu1 %v389_v22 }
  0x1e   :  { %394 = vmatprep.subr.bf16.mxu0 %v393_v25  ;;  %404 = vmatprep.subr.bf16.mxu1 %v393_v25 }
  0x21   :  { %396 = vmatpush3.bf16.msra.mxu0 %v393_v25  ;;  %412 = vmatpush3.bf16.msra.mxu1 %v393_v25 }
  0x24   :  { %342 = vmatmul.mubr.f32.vlgmr.msra.gmra.mrb[0].mxu0 %v14_v26  ;;  %354 = vmatmul.mubr.f32.vlgmr.msra.gmra.mrb[0].mxu1 %v22_v27 }
  0x25   :  { %344 = vmatprep.mubr.f32.mxu0 %v15_v28  ;;  %356 = vmatprep.mubr.f32.mxu1 %v23_v29 }
  0x28   :  { %345 = vmatmul.mubr.f32.gmra.mrb[2].mxu0 %v16_v30  ;;  %357 = vmatmul.mubr.f32.gmra.mrb[2].mxu1 %v24_v31 }
  0x29   :  { %347 = vmatprep.mubr.f32.mxu0 %v17_v32  ;;  %359 = vmatprep.mubr.f32.mxu1 %v25_v33 }
  0x2c   :  { %348 = vmatmul.mubr.f32.gmra.mrb[4].mxu0 %v18_v34  ;;  %360 = vmatmul.mubr.f32.gmra.mrb[4].mxu1 %v26_v35 }
  0x2d   :  { %350 = vmatprep.mubr.f32.mxu0 %v19_v36  ;;  %362 = vmatprep.mubr.f32.mxu1 %v27_v37 }
  0x30   :  { %351 = vmatmul.mubr.f32.gmra.mrb[6].mxu0 %v20_v38  ;;  %363 = vmatmul.mubr.f32.gmra.mrb[6].mxu1 %v28_v39 }
  0xf7   :  { %v343_v40 = vpop.f32.mrb[0].mxu0  ;;  %v355_v41 = vpop.f32.mrb[0].mxu1 }
  0xf8   :  { %191 = vst [vmem:[%s582_s2 + $0x8] sm:$0xff] %v343_v40  ;;  %v228_v42 = vmul.f32 %v343_v40, %v343_v40  ;;  %v111_v43 = vpop.f32.mrb[1].mxu0  ;;  %199 = vst [vmem:[%s582_s2 + $0x48] sm:$0xff] %v355_v41  ;;  %v151_v44 = vpop.f32.mrb[1].mxu1  ;;  %v236_v16 = vmul.f32 %v355_v41, %v355_v41 }
  0xf9   :  { %190 = vst [vmem:[%s582_s2] sm:$0xff] %v111_v43  ;;  %v206_v45 = vadd.f32 %v343_v40, %v111_v43  ;;  %v227_v46 = vmul.f32 %v111_v43, %v111_v43  ;;  %198 = vst [vmem:[%s582_s2 + $0x40] sm:$0xff] %v151_v44  ;;  %v235_v13 = vmul.f32 %v151_v44, %v151_v44 }
  0xfb   :  { %v243_v47 = vadd.f32 %v228_v42, %v227_v46  ;;  %v346_v48 = vpop.f32.mrb[2].mxu0  ;;  %v358_v49 = vpop.f32.mrb[2].mxu1 }
  0xfc   :  { %193 = vst [vmem:[%s582_s2 + $0x18] sm:$0xff] %v346_v48  ;;  %v121_v50 = vpop.f32.mrb[3].mxu0  ;;  %201 = vst [vmem:[%s582_s2 + $0x58] sm:$0xff] %v358_v49  ;;  %v161_v51 = vpop.f32.mrb[3].mxu1  ;;  %v230_v54 = vmul.f32 %v346_v48, %v346_v48  ;;  %v238_v22 = vmul.f32 %v358_v49, %v358_v49 }
  0xfd   :  { %192 = vst [vmem:[%s582_s2 + $0x10] sm:$0xff] %v121_v50  ;;  %v207_v52 = vadd.f32 %v206_v45, %v121_v50  ;;  %v229_v53 = vmul.f32 %v121_v50, %v121_v50  ;;  %200 = vst [vmem:[%s582_s2 + $0x50] sm:$0xff] %v161_v51  ;;  %v237_v19 = vmul.f32 %v161_v51, %v161_v51 }
  0xff   :  { %v244_v55 = vadd.f32 %v243_v47, %v229_v53  ;;  %v349_v56 = vpop.f32.mrb[4].mxu0  ;;  %v208_v57 = vadd.f32 %v346_v48, %v207_v52  ;;  %v361_v58 = vpop.f32.mrb[4].mxu1 }
 0x100   :  { %195 = vst [vmem:[%s582_s2 + $0x28] sm:$0xff] %v349_v56  ;;  %v131_v59 = vpop.f32.mrb[5].mxu0  ;;  %203 = vst [vmem:[%s582_s2 + $0x68] sm:$0xff] %v361_v58  ;;  %v171_v60 = vpop.f32.mrb[5].mxu1  ;;  %v232_v0 = vmul.f32 %v349_v56, %v349_v56  ;;  %v240_v28 = vmul.f32 %v361_v58, %v361_v58 }
 0x101   :  { %194 = vst [vmem:[%s582_s2 + $0x20] sm:$0xff] %v131_v59  ;;  %v209_v61 = vadd.f32 %v208_v57, %v131_v59  ;;  %v231_v62 = vmul.f32 %v131_v59, %v131_v59  ;;  %v245_v63 = vadd.f32 %v244_v55, %v230_v54  ;;  %202 = vst [vmem:[%s582_s2 + $0x60] sm:$0xff] %v171_v60 }
 0x102   :  { %v239_v25 = vmul.f32 %v171_v60, %v171_v60 }
 0x103   :  { %v246_v1 = vadd.f32 %v245_v63, %v231_v62  ;;  %v352_v2 = vpop.f32.mrb[6].mxu0  ;;  %v210_v3 = vadd.f32 %v349_v56, %v209_v61  ;;  %v364_v4 = vpop.f32.mrb[6].mxu1 }
 0x104   :  { %197 = vst [vmem:[%s582_s2 + $0x38] sm:$0xff] %v352_v2  ;;  %v141_v5 = vpop.f32.mrb[7].mxu0  ;;  %205 = vst [vmem:[%s582_s2 + $0x78] sm:$0xff] %v364_v4  ;;  %v181_v6 = vpop.f32.mrb[7].mxu1  ;;  %v234_v10 = vmul.f32 %v352_v2, %v352_v2  ;;  %v242_v34 = vmul.f32 %v364_v4, %v364_v4 }
 0x105   :  { %196 = vst [vmem:[%s582_s2 + $0x30] sm:$0xff] %v141_v5  ;;  %v211_v7 = vadd.f32 %v210_v3, %v141_v5  ;;  %v233_v8 = vmul.f32 %v141_v5, %v141_v5  ;;  %v247_v9 = vadd.f32 %v246_v1, %v232_v0  ;;  %204 = vst [vmem:[%s582_s2 + $0x70] sm:$0xff] %v181_v6 }
 0x106   :  { %v241_v31 = vmul.f32 %v181_v6, %v181_v6 }
 0x107   :  { %v212_v11 = vadd.f32 %v352_v2, %v211_v7  ;;  %v248_v12 = vadd.f32 %v247_v9, %v233_v8 }
 0x109   :  { %v249_v14 = vadd.f32 %v248_v12, %v234_v10  ;;  %v213_v15 = vadd.f32 %v212_v11, %v151_v44 }
 0x10b   :  { %v250_v17 = vadd.f32 %v249_v14, %v235_v13  ;;  %v214_v18 = vadd.f32 %v355_v41, %v213_v15 }
 0x10d   :  { %v215_v20 = vadd.f32 %v214_v18, %v161_v51  ;;  %v251_v21 = vadd.f32 %v250_v17, %v236_v16 }
 0x10f   :  { %v252_v23 = vadd.f32 %v251_v21, %v237_v19  ;;  %v216_v24 = vadd.f32 %v358_v49, %v215_v20 }
 0x111   :  { %v217_v26 = vadd.f32 %v216_v24, %v171_v60  ;;  %v253_v27 = vadd.f32 %v252_v23, %v238_v22 }
 0x113   :  { %v254_v29 = vadd.f32 %v253_v27, %v239_v25  ;;  %v218_v30 = vadd.f32 %v361_v58, %v217_v26 }
 0x115   :  { %v219_v32 = vadd.f32 %v218_v30, %v181_v6  ;;  %v255_v33 = vadd.f32 %v254_v29, %v240_v28 }
 0x117   :  { %v220_v35 = vadd.f32 %v364_v4, %v219_v32  ;;  %v256_v36 = vadd.f32 %v255_v33, %v241_v31 }
 0x119   :  { %v221_v37 = vrot.slane %v220_v35, 4  ;;  %v257_v38 = vadd.f32 %v256_v36, %v242_v34 }
 0x11b   :  { %v222_v39 = vadd.f32 %v221_v37, %v220_v35  ;;  %v258_v40 = vrot.slane %v257_v38, 4 }
 0x11d   :  { %v223_v41 = vrot.slane %v222_v39, 2  ;;  %v259_v42 = vadd.f32 %v258_v40, %v257_v38 }
 0x11f   :  { %v224_v43 = vadd.f32 %v223_v41, %v222_v39  ;;  %v260_v44 = vrot.slane %v259_v42, 2 }
 0x121   :  { %v225_v45 = vrot.slane %v224_v43, 1  ;;  %v261_v46 = vadd.f32 %v260_v44, %v259_v42 }
 0x123   :  { %v262_v47 = vrot.slane %v261_v46, 1  ;;  %v226_v48 = vadd.f32 %v225_v45, %v224_v43 }
 0x125   :  { %v263_v49 = vadd.f32 %v262_v47, %v261_v46 }
 0x127   :  { %v265_v50 = vsel %vm264_vm0, %v226_v48, %v263_v49 }
 0x128   :  { %v267_v51 = vsel %vm266_vm1, %v265_v50, 0.0 }
 0x129   :  { %268 = vst [vmem:[%s583_s3] sm:$0xff] %v267_v51 }

// kernel: stage1_d_forward.9
= control target key start
LH: loop header
LB: loop body
LE: loop exit
PB: predicated region body
PF: predicated region fallthrough
CT: control target
= control target key end

     0   :  { %s305_s0 = inlined_call_operand.vmem [shape: f32[128,128], index: 0, kind: input, shape index: {}]   ;;  %s306_s1 = inlined_call_operand.vmem [shape: f32[1,128], index: 1, kind: input, shape index: {}]   ;;  %s307_s2 = inlined_call_operand.vmem [shape: f32[1,128], index: 2, kind: input, shape index: {}]   ;;  %s308_s3 = inlined_call_operand.vmem [shape: f32[128,128], index: 3, kind: output, shape index: {}]  }
   0x1   :  { %v14_v0 = vld [vmem:[%s305_s0] sm:$0xff]  ;;  %v15_v4 = vld [vmem:[%s305_s0 + $0x8] sm:$0xff]  ;;  %v16_v5 = vld [vmem:[%s305_s0 + $0x10] sm:$0xff] }
   0x2   :  { %v172_v1 = vld [vmem:[%s306_s1] ss:$0 sm:$0xff]  ;;  %v17_v6 = vld [vmem:[%s305_s0 + $0x18] sm:$0xff]  ;;  %v19_v11 = vld [vmem:[%s305_s0 + $0x28] sm:$0xff] }
   0x3   :  { %v177_v2 = vld [vmem:[%s307_s2] ss:$0 sm:$0xff]  ;;  %v37_v3 = vmul.f32 %v172_v1, %v14_v0  ;;  %v38_v7 = vmul.f32 %v172_v1, %v15_v4  ;;  %v39_v8 = vmul.f32 %v172_v1, %v16_v5  ;;  %v40_v9 = vmul.f32 %v172_v1, %v17_v6  ;;  %v20_v12 = vld [vmem:[%s305_s0 + $0x30] sm:$0xff]  ;;  %v21_v17 = vld [vmem:[%s305_s0 + $0x38] sm:$0xff] }
   0x4   :  { %v18_v10 = vld [vmem:[%s305_s0 + $0x20] sm:$0xff]  ;;  %v42_v15 = vmul.f32 %v172_v1, %v19_v11  ;;  %v43_v16 = vmul.f32 %v172_v1, %v20_v12  ;;  %v44_v21 = vmul.f32 %v172_v1, %v21_v17  ;;  %v23_v30 = vld [vmem:[%s305_s0 + $0x48] sm:$0xff]  ;;  %v24_v31 = vld [vmem:[%s305_s0 + $0x50] sm:$0xff] }
   0x5   :  { %v60_v13 = vadd.f32 %v177_v2, %v37_v3  ;;  %v41_v14 = vmul.f32 %v172_v1, %v18_v10  ;;  %v61_v18 = vadd.f32 %v177_v2, %v38_v7  ;;  %v62_v19 = vadd.f32 %v177_v2, %v39_v8  ;;  %v22_v25 = vld [vmem:[%s305_s0 + $0x40] sm:$0xff]  ;;  %v25_v43 = vld [vmem:[%s305_s0 + $0x58] sm:$0xff]  ;;  %v27_v45 = vld [vmem:[%s305_s0 + $0x68] sm:$0xff] }
   0x6   :  { %v63_v20 = vadd.f32 %v177_v2, %v40_v9  ;;  %v65_v24 = vadd.f32 %v177_v2, %v42_v15  ;;  %v66_v37 = vadd.f32 %v177_v2, %v43_v16  ;;  %v67_v38 = vadd.f32 %v177_v2, %v44_v21  ;;  %v26_v44 = vld [vmem:[%s305_s0 + $0x60] sm:$0xff]  ;;  %v28_v56 = vld [vmem:[%s305_s0 + $0x70] sm:$0xff]  ;;  %v29_v4 = vld [vmem:[%s305_s0 + $0x78] sm:$0xff] }
   0x7   :  { %vm76_vm0 = vcmp.gt.f32.partialorder %v60_v13, 0.0  ;;  %v92_v22 = vmul.f32 0.2, %v60_v13  ;;  %v64_v23 = vadd.f32 %v177_v2, %v41_v14  ;;  %vm77_vm1 = vcmp.gt.f32.partialorder %v61_v18, 0.0 }
   0x8   :  { %v93_v26 = vmul.f32 0.2, %v61_v18  ;;  %vm78_vm2 = vcmp.gt.f32.partialorder %v62_v19, 0.0  ;;  %v94_v27 = vmul.f32 0.2, %v62_v19  ;;  %vm79_vm3 = vcmp.gt.f32.partialorder %v63_v20, 0.0 }
   0x9   :  { %v108_v28 = vsel %vm76_vm0, %v60_v13, %v92_v22  ;;  %v95_v29 = vmul.f32 0.2, %v63_v20  ;;  %vm80_vm4 = vcmp.gt.f32.partialorder %v64_v23, 0.0  ;;  %v96_v34 = vmul.f32 0.2, %v64_v23 }
   0xa   :  { %124 = vst [vmem:[%s308_s3] sm:$0xff] %v108_v28  ;;  %v109_v32 = vsel %vm77_vm1, %v61_v18, %v93_v26  ;;  %v110_v33 = vsel %vm78_vm2, %v62_v19, %v94_v27  ;;  %vm81_vm5 = vcmp.gt.f32.partialorder %v65_v24, 0.0  ;;  %v97_v36 = vmul.f32 0.2, %v65_v24 }
   0xb   :  { %125 = vst [vmem:[%s308_s3 + $0x8] sm:$0xff] %v109_v32  ;;  %126 = vst [vmem:[%s308_s3 + $0x10] sm:$0xff] %v110_v33  ;;  %v111_v35 = vsel %vm79_vm3, %v63_v20, %v95_v29  ;;  %v112_v39 = vsel %vm80_vm4, %v64_v23, %v96_v34  ;;  %v45_v40 = vmul.f32 %v172_v1, %v22_v25  ;;  %vm82_vm6 = vcmp.gt.f32.partialorder %v66_v37, 0.0 }
   0xc   :  { %127 = vst [vmem:[%s308_s3 + $0x18] sm:$0xff] %v111_v35  ;;  %v46_v41 = vmul.f32 %v172_v1, %v23_v30  ;;  %v47_v42 = vmul.f32 %v172_v1, %v24_v31  ;;  %128 = vst [vmem:[%s308_s3 + $0x20] sm:$0xff] %v112_v39  ;;  %v113_v46 = vsel %vm81_vm5, %v65_v24, %v97_v36  ;;  %v98_v47 = vmul.f32 0.2, %v66_v37 }
   0xd   :  { %vm83_vm7 = vcmp.gt.f32.partialorder %v67_v38, 0.0  ;;  %129 = vst [vmem:[%s308_s3 + $0x28] sm:$0xff] %v113_v46  ;;  %v99_v48 = vmul.f32 0.2, %v67_v38  ;;  %v68_v49 = vadd.f32 %v177_v2, %v45_v40  ;;  %v48_v53 = vmul.f32 %v172_v1, %v25_v43 }
   0xe   :  { %v69_v50 = vadd.f32 %v177_v2, %v46_v41  ;;  %v70_v51 = vadd.f32 %v177_v2, %v47_v42  ;;  %v114_v52 = vsel %vm82_vm6, %v66_v37, %v98_v47  ;;  %v49_v54 = vmul.f32 %v172_v1, %v26_v44 }
   0xf   :  { %v50_v55 = vmul.f32 %v172_v1, %v27_v45  ;;  %130 = vst [vmem:[%s308_s3 + $0x30] sm:$0xff] %v114_v52  ;;  %v115_v57 = vsel %vm83_vm7, %v67_v38, %v99_v48  ;;  %vm84_vm8 = vcmp.gt.f32.partialorder %v68_v49, 0.0  ;;  %v100_v58 = vmul.f32 0.2, %v68_v49 }
  0x10   :  { %vm85_vm9 = vcmp.gt.f32.partialorder %v69_v50, 0.0  ;;  %131 = vst [vmem:[%s308_s3 + $0x38] sm:$0xff] %v115_v57  ;;  %v101_v59 = vmul.f32 0.2, %v69_v50  ;;  %vm86_vm10 = vcmp.gt.f32.partialorder %v70_v51, 0.0  ;;  %v71_v61 = vadd.f32 %v177_v2, %v48_v53 }
  0x11   :  { %v102_v60 = vmul.f32 0.2, %v70_v51  ;;  %v116_v62 = vsel %vm84_vm8, %v68_v49, %v100_v58  ;;  %v72_v63 = vadd.f32 %v177_v2, %v49_v54  ;;  %v73_v0 = vadd.f32 %v177_v2, %v50_v55 }
  0x12   :  { %v51_v3 = vmul.f32 %v172_v1, %v28_v56  ;;  %132 = vst [vmem:[%s308_s3 + $0x40] sm:$0xff] %v116_v62  ;;  %v117_v5 = vsel %vm85_vm9, %v69_v50, %v101_v59  ;;  %vm87_vm11 = vcmp.gt.f32.partialorder %v71_v61, 0.0  ;;  %v103_v7 = vmul.f32 0.2, %v71_v61 }
  0x13   :  { %v118_v6 = vsel %vm86_vm10, %v70_v51, %v102_v60  ;;  %133 = vst [vmem:[%s308_s3 + $0x48] sm:$0xff] %v117_v5  ;;  %vm88_vm12 = vcmp.gt.f32.partialorder %v72_v63, 0.0  ;;  %v104_v8 = vmul.f32 0.2, %v72_v63  ;;  %vm89_vm13 = vcmp.gt.f32.partialorder %v73_v0, 0.0 }
  0x14   :  { %134 = vst [vmem:[%s308_s3 + $0x50] sm:$0xff] %v118_v6  ;;  %v105_v9 = vmul.f32 0.2, %v73_v0  ;;  %v119_v10 = vsel %vm87_vm11, %v71_v61, %v103_v7  ;;  %v74_v11 = vadd.f32 %v177_v2, %v51_v3  ;;  %v52_v12 = vmul.f32 %v172_v1, %v29_v4 }
  0x15   :  { %135 = vst [vmem:[%s308_s3 + $0x58] sm:$0xff] %v119_v10  ;;  %v120_v13 = vsel %vm88_vm12, %v72_v63, %v104_v8 }
  0x16   :  { %v121_v14 = vsel %vm89_vm13, %v73_v0, %v105_v9  ;;  %136 = vst [vmem:[%s308_s3 + $0x60] sm:$0xff] %v120_v13  ;;  %vm90_vm14 = vcmp.gt.f32.partialorder %v74_v11, 0.0  ;;  %v106_v15 = vmul.f32 0.2, %v74_v11  ;;  %v75_v16 = vadd.f32 %v177_v2, %v52_v12 }
  0x17   :  { %137 = vst [vmem:[%s308_s3 + $0x68] sm:$0xff] %v121_v14 }
  0x18   :  { %v122_v17 = vsel %vm90_vm14, %v74_v11, %v106_v15  ;;  %vm91_vm15 = vcmp.gt.f32.partialorder %v75_v16, 0.0  ;;  %v107_v1 = vmul.f32 0.2, %v75_v16 }
  0x19   :  { %138 = vst [vmem:[%s308_s3 + $0x70] sm:$0xff] %v122_v17 }
  0x1a   :  { %v123_v18 = vsel %vm91_vm15, %v75_v16, %v107_v1 }
  0x1b   :  { %139 = vst [vmem:[%s308_s3 + $0x78] sm:$0xff] %v123_v18 }

// kernel: stage1_d_forward.10
= control target key start
LH: loop header
LB: loop body
LE: loop exit
PB: predicated region body
PF: predicated region fallthrough
CT: control target
= control target key end

     0   :  { %vm164_vm0 = vcmask 1040384   ;;  %vm166_vm1 = vcmask 1041408   ;;  %s424_s1 = inlined_call_operand.vmem [shape: f32[256,128], index: 1, kind: input, shape index: {}]   ;;  %s425_s0 = inlined_call_operand.vmem [shape: f32[32,256], index: 0, kind: input, shape index: {}]   ;;  %s426_s2 = inlined_call_operand.vmem [shape: f32[32,128], index: 2, kind: output, shape index: {0}]   ;;  %s427_s3 = inlined_call_operand.vmem [shape: f32[1,8,128], index: 3, kind: output, shape index: {1}]  }
   0x1   :  { %v37_v0 = vld [vmem:[%s424_s1 + $0x80] sm:$0xff]  ;;  %v38_v1 = vld [vmem:[%s424_s1 + $0x88] sm:$0xff]  ;;  %v39_v5 = vld [vmem:[%s424_s1 + $0x90] sm:$0xff] }
   0x2   :  { %v21_v2 = vld [vmem:[%s424_s1] sm:$0xff]  ;;  %v221_v3 = vpack.c.bf16 %v38_v1, %v37_v0  ;;  %v22_v4 = vld [vmem:[%s424_s1 + $0x8] sm:$0xff]  ;;  %v40_v6 = vld [vmem:[%s424_s1 + $0x98] sm:$0xff] }
   0x3   :  { %v223_v7 = vpack.c.bf16 %v22_v4, %v21_v2  ;;  %v225_v8 = vpack.c.bf16 %v40_v6, %v39_v5  ;;  %v23_v9 = vld [vmem:[%s424_s1 + $0x10] sm:$0xff]  ;;  %v24_v10 = vld [vmem:[%s424_s1 + $0x18] sm:$0xff]  ;;  %v41_v11 = vld [vmem:[%s424_s1 + $0xa0] sm:$0xff] }
   0x4   :  { %222 = vmatprep.subr.bf16.mxu0 %v221_v3  ;;  %253 = vmatprep.subr.bf16.mxu1 %v221_v3  ;;  %v42_v12 = vld [vmem:[%s424_s1 + $0xa8] sm:$0xff]  ;;  %v227_v13 = vpack.c.bf16 %v24_v10, %v23_v9  ;;  %v25_v15 = vld [vmem:[%s424_s1 + $0x20] sm:$0xff]  ;;  %v43_v17 = vld [vmem:[%s424_s1 + $0xb0] sm:$0xff] }
   0x5   :  { %224 = vmatpush3.bf16.msra.mxu0 %v223_v7  ;;  %261 = vmatpush3.bf16.msra.mxu1 %v223_v7  ;;  %v229_v14 = vpack.c.bf16 %v42_v12, %v41_v11  ;;  %v26_v16 = vld [vmem:[%s424_s1 + $0x28] sm:$0xff]  ;;  %v44_v18 = vld [vmem:[%s424_s1 + $0xb8] sm:$0xff]  ;;  %v27_v21 = vld [vmem:[%s424_s1 + $0x30] sm:$0xff] }
   0x6   :  { %226 = vmatprep.subr.bf16.mxu0 %v225_v8  ;;  %254 = vmatprep.subr.bf16.mxu1 %v225_v8  ;;  %v231_v19 = vpack.c.bf16 %v26_v16, %v25_v15  ;;  %v233_v20 = vpack.c.bf16 %v44_v18, %v43_v17  ;;  %v28_v22 = vld [vmem:[%s424_s1 + $0x38] sm:$0xff]  ;;  %v45_v23 = vld [vmem:[%s424_s1 + $0xc0] sm:$0xff]  ;;  %v46_v24 = vld [vmem:[%s424_s1 + $0xc8] sm:$0xff] }
   0x7   :  { %v14_v25 = vld [vmem:[%s425_s0 + $0x8] sm:$0xff]  ;;  %v235_v27 = vpack.c.bf16 %v28_v22, %v27_v21  ;;  %v237_v28 = vpack.c.bf16 %v46_v24, %v45_v23  ;;  %v29_v29 = vld [vmem:[%s424_s1 + $0x40] sm:$0xff]  ;;  %v47_v31 = vld [vmem:[%s424_s1 + $0xd0] sm:$0xff] }
   0x8   :  { %117 = vmatprep.mubr.f32.mxu0 %v14_v25  ;;  %v18_v26 = vld [vmem:[%s425_s0 + $0x28] sm:$0xff]  ;;  %v48_v32 = vld [vmem:[%s424_s1 + $0xd8] sm:$0xff]  ;;  %v31_v35 = vld [vmem:[%s424_s1 + $0x50] sm:$0xff] }
   0x9   :  { %228 = vmatpush3.bf16.msra.mxu0 %v227_v13  ;;  %262 = vmatpush3.bf16.msra.mxu1 %v227_v13  ;;  %v30_v30 = vld [vmem:[%s424_s1 + $0x48] sm:$0xff]  ;;  %v241_v34 = vpack.c.bf16 %v48_v32, %v47_v31  ;;  %v32_v36 = vld [vmem:[%s424_s1 + $0x58] sm:$0xff]  ;;  %v49_v37 = vld [vmem:[%s424_s1 + $0xe0] sm:$0xff] }
   0xa   :  { %230 = vmatprep.subr.bf16.mxu0 %v229_v14  ;;  %255 = vmatprep.subr.bf16.mxu1 %v229_v14  ;;  %v239_v33 = vpack.c.bf16 %v30_v30, %v29_v29  ;;  %v50_v38 = vld [vmem:[%s424_s1 + $0xe8] sm:$0xff]  ;;  %v243_v39 = vpack.c.bf16 %v32_v36, %v31_v35  ;;  %v33_v41 = vld [vmem:[%s424_s1 + $0x60] sm:$0xff]  ;;  %v51_v43 = vld [vmem:[%s424_s1 + $0xf0] sm:$0xff] }
   0xb   :  { %127 = vmatprep.mubr.f32.mxu1 %v18_v26  ;;  %v245_v40 = vpack.c.bf16 %v50_v38, %v49_v37  ;;  %v34_v42 = vld [vmem:[%s424_s1 + $0x68] sm:$0xff]  ;;  %v52_v44 = vld [vmem:[%s424_s1 + $0xf8] sm:$0xff]  ;;  %v35_v47 = vld [vmem:[%s424_s1 + $0x70] sm:$0xff] }
   0xc   :  { %v247_v45 = vpack.c.bf16 %v34_v42, %v33_v41  ;;  %v249_v46 = vpack.c.bf16 %v52_v44, %v51_v43  ;;  %v36_v48 = vld [vmem:[%s424_s1 + $0x78] sm:$0xff]  ;;  %v13_v50 = vld [vmem:[%s425_s0] sm:$0xff]  ;;  %v15_v54 = vld [vmem:[%s425_s0 + $0x10] sm:$0xff] }
   0xd   :  { %232 = vmatpush3.bf16.msra.mxu0 %v231_v19  ;;  %263 = vmatpush3.bf16.msra.mxu1 %v231_v19  ;;  %v251_v49 = vpack.c.bf16 %v36_v48, %v35_v47  ;;  %v17_v51 = vld [vmem:[%s425_s0 + $0x20] sm:$0xff]  ;;  %v16_v52 = vld [vmem:[%s425_s0 + $0x18] sm:$0xff]  ;;  %v19_v55 = vld [vmem:[%s425_s0 + $0x30] sm:$0xff] }
   0xe   :  { %234 = vmatprep.subr.bf16.mxu0 %v233_v20  ;;  %256 = vmatprep.subr.bf16.mxu1 %v233_v20  ;;  %v20_v53 = vld [vmem:[%s425_s0 + $0x38] sm:$0xff] }
  0x11   :  { %236 = vmatpush3.bf16.msra.mxu0 %v235_v27  ;;  %264 = vmatpush3.bf16.msra.mxu1 %v235_v27 }
  0x12   :  { %238 = vmatprep.subr.bf16.mxu0 %v237_v28  ;;  %257 = vmatprep.subr.bf16.mxu1 %v237_v28 }
  0x15   :  { %240 = vmatpush3.bf16.msra.mxu0 %v239_v33  ;;  %265 = vmatpush3.bf16.msra.mxu1 %v239_v33 }
  0x16   :  { %242 = vmatprep.subr.bf16.mxu0 %v241_v34  ;;  %258 = vmatprep.subr.bf16.mxu1 %v241_v34 }
  0x19   :  { %244 = vmatpush3.bf16.msra.mxu0 %v243_v39  ;;  %266 = vmatpush3.bf16.msra.mxu1 %v243_v39 }
  0x1a   :  { %246 = vmatprep.subr.bf16.mxu0 %v245_v40  ;;  %259 = vmatprep.subr.bf16.mxu1 %v245_v40 }
  0x1d   :  { %248 = vmatpush3.bf16.msra.mxu0 %v247_v45  ;;  %267 = vmatpush3.bf16.msra.mxu1 %v247_v45 }
  0x1e   :  { %250 = vmatprep.subr.bf16.mxu0 %v249_v46  ;;  %260 = vmatprep.subr.bf16.mxu1 %v249_v46 }
  0x21   :  { %252 = vmatpush3.bf16.msra.mxu0 %v251_v49  ;;  %268 = vmatpush3.bf16.msra.mxu1 %v251_v49 }
  0x24   :  { %118 = vmatmul.mubr.f32.vlgmr.msra.gmra.mrb[0].mxu0 %v13_v50  ;;  %128 = vmatmul.mubr.f32.vlgmr.msra.gmra.mrb[0].mxu1 %v17_v51 }
  0x25   :  { %122 = vmatprep.mubr.f32.mxu0 %v16_v52  ;;  %132 = vmatprep.mubr.f32.mxu1 %v20_v53 }
  0x28   :  { %123 = vmatmul.mubr.f32.gmra.mrb[2].mxu0 %v15_v54  ;;  %133 = vmatmul.mubr.f32.gmra.mrb[2].mxu1 %v19_v55 }
  0xf7   :  { %v209_v56 = vpop.f32.mrb[0].mxu0  ;;  %v215_v57 = vpop.f32.mrb[0].mxu1 }
  0xf8   :  { %v210_v58 = vpop.f32.mrb[1].mxu0  ;;  %v216_v59 = vpop.f32.mrb[1].mxu1 }
  0xf9   :  { %v211_v60 = vadd.f32 %v210_v58, %v209_v56  ;;  %v217_v61 = vadd.f32 %v216_v59, %v215_v57 }
  0xfb   :  { %138 = vst [vmem:[%s426_s2] sm:$0xff] %v211_v60  ;;  %v212_v62 = vpop.f32.mrb[2].mxu0  ;;  %140 = vst [vmem:[%s426_s2 + $0x10] sm:$0xff] %v217_v61  ;;  %v218_v63 = vpop.f32.mrb[2].mxu1  ;;  %v151_v4 = vmul.f32 %v211_v60, %v211_v60  ;;  %v153_v7 = vmul.f32 %v217_v61, %v217_v61 }
  0xfc   :  { %v213_v0 = vpop.f32.mrb[3].mxu0  ;;  %v219_v1 = vpop.f32.mrb[3].mxu1 }
  0xfd   :  { %v214_v2 = vadd.f32 %v213_v0, %v212_v62  ;;  %v220_v3 = vadd.f32 %v219_v1, %v218_v63 }
  0xff   :  { %139 = vst [vmem:[%s426_s2 + $0x8] sm:$0xff] %v214_v2  ;;  %v142_v5 = vadd.f32 %v214_v2, %v211_v60  ;;  %v152_v6 = vmul.f32 %v214_v2, %v214_v2  ;;  %141 = vst [vmem:[%s426_s2 + $0x18] sm:$0xff] %v220_v3  ;;  %v154_v10 = vmul.f32 %v220_v3, %v220_v3 }
 0x101   :  { %v155_v8 = vadd.f32 %v152_v6, %v151_v4  ;;  %v143_v9 = vadd.f32 %v217_v61, %v142_v5 }
 0x103   :  { %v144_v11 = vadd.f32 %v220_v3, %v143_v9  ;;  %v156_v12 = vadd.f32 %v155_v8, %v153_v7 }
 0x105   :  { %v145_v13 = vrot.slane %v144_v11, 4  ;;  %v157_v14 = vadd.f32 %v156_v12, %v154_v10 }
 0x107   :  { %v146_v15 = vadd.f32 %v145_v13, %v144_v11  ;;  %v158_v16 = vrot.slane %v157_v14, 4 }
 0x109   :  { %v147_v17 = vrot.slane %v146_v15, 2  ;;  %v159_v18 = vadd.f32 %v158_v16, %v157_v14 }
 0x10b   :  { %v148_v19 = vadd.f32 %v147_v17, %v146_v15  ;;  %v160_v20 = vrot.slane %v159_v18, 2 }
 0x10d   :  { %v149_v21 = vrot.slane %v148_v19, 1  ;;  %v161_v22 = vadd.f32 %v160_v20, %v159_v18 }
 0x10f   :  { %v162_v23 = vrot.slane %v161_v22, 1  ;;  %v150_v24 = vadd.f32 %v149_v21, %v148_v19 }
 0x111   :  { %v163_v25 = vadd.f32 %v162_v23, %v161_v22 }
 0x113   :  { %v165_v26 = vsel %vm164_vm0, %v150_v24, %v163_v25 }
 0x114   :  { %v167_v27 = vsel %vm166_vm1, %v165_v26, 0.0 }
 0x115   :  { %168 = vst [vmem:[%s427_s3] sm:$0xff] %v167_v27 }

// kernel: stage1_d_forward.11
= control target key start
LH: loop header
LB: loop body
LE: loop exit
PB: predicated region body
PF: predicated region fallthrough
CT: control target
= control target key end

     0   :  { %s112_s0 = inlined_call_operand.vmem [shape: f32[32,128], index: 0, kind: input, shape index: {}]   ;;  %s113_s1 = inlined_call_operand.vmem [shape: f32[1,128], index: 1, kind: input, shape index: {}]   ;;  %s114_s2 = inlined_call_operand.vmem [shape: f32[1,128], index: 2, kind: input, shape index: {}]   ;;  %s115_s3 = inlined_call_operand.vmem [shape: f32[32,128], index: 3, kind: output, shape index: {}]  }
   0x1   :  { %v14_v0 = vld [vmem:[%s112_s0] sm:$0xff]  ;;  %v15_v4 = vld [vmem:[%s112_s0 + $0x8] sm:$0xff]  ;;  %v16_v5 = vld [vmem:[%s112_s0 + $0x10] sm:$0xff] }
   0x2   :  { %v60_v1 = vld [vmem:[%s113_s1] ss:$0 sm:$0xff]  ;;  %v17_v6 = vld [vmem:[%s112_s0 + $0x18] sm:$0xff] }
   0x3   :  { %v61_v2 = vld [vmem:[%s114_s2] ss:$0 sm:$0xff]  ;;  %v25_v3 = vmul.f32 %v60_v1, %v14_v0  ;;  %v26_v7 = vmul.f32 %v60_v1, %v15_v4  ;;  %v27_v8 = vmul.f32 %v60_v1, %v16_v5  ;;  %v28_v9 = vmul.f32 %v60_v1, %v17_v6 }
   0x5   :  { %v36_v10 = vadd.f32 %v61_v2, %v25_v3  ;;  %v37_v11 = vadd.f32 %v61_v2, %v26_v7  ;;  %v38_v12 = vadd.f32 %v61_v2, %v27_v8  ;;  %v39_v13 = vadd.f32 %v61_v2, %v28_v9 }
   0x7   :  { %vm40_vm0 = vcmp.gt.f32.partialorder %v36_v10, 0.0  ;;  %v44_v14 = vmul.f32 0.2, %v36_v10  ;;  %vm41_vm1 = vcmp.gt.f32.partialorder %v37_v11, 0.0  ;;  %v45_v15 = vmul.f32 0.2, %v37_v11 }
   0x8   :  { %vm42_vm2 = vcmp.gt.f32.partialorder %v38_v12, 0.0  ;;  %v46_v16 = vmul.f32 0.2, %v38_v12  ;;  %vm43_vm3 = vcmp.gt.f32.partialorder %v39_v13, 0.0  ;;  %v47_v18 = vmul.f32 0.2, %v39_v13 }
   0x9   :  { %v48_v17 = vsel %vm40_vm0, %v36_v10, %v44_v14  ;;  %v49_v19 = vsel %vm41_vm1, %v37_v11, %v45_v15 }
   0xa   :  { %52 = vst [vmem:[%s115_s3] sm:$0xff] %v48_v17  ;;  %v50_v20 = vsel %vm42_vm2, %v38_v12, %v46_v16  ;;  %53 = vst [vmem:[%s115_s3 + $0x8] sm:$0xff] %v49_v19  ;;  %v51_v21 = vsel %vm43_vm3, %v39_v13, %v47_v18 }
   0xb   :  { %54 = vst [vmem:[%s115_s3 + $0x10] sm:$0xff] %v50_v20  ;;  %55 = vst [vmem:[%s115_s3 + $0x18] sm:$0xff] %v51_v21 }

// kernel: stage1_d_forward.13
= control target key start
LH: loop header
LB: loop body
LE: loop exit
PB: predicated region body
PF: predicated region fallthrough
CT: control target
= control target key end

     0   :  { %s119_s0 = inlined_call_operand.vmem [shape: f32[8,128], index: 0, kind: input, shape index: {}]   ;;  %s120_s1 = inlined_call_operand.vmem [shape: f32[1,128], index: 1, kind: input, shape index: {}]   ;;  %s121_s2 = inlined_call_operand.vmem [shape: f32[1,128], index: 2, kind: input, shape index: {}]   ;;  %s122_s3 = inlined_call_operand.hbm [shape: f32[8,128], index: 3, kind: output, shape index: {}]  }
   0x1   :  { %v15_v0 = vld [vmem:[%s119_s0] sm:$0xff] }
   0x2   :  { %v50_v1 = vld [vmem:[%s120_s1] ss:$0 sm:$0xff] }
   0x3   :  { %v51_v2 = vld [vmem:[%s121_s2] ss:$0 sm:$0xff]  ;;  %v23_v3 = vmul.f32 %v50_v1, %v15_v0 }
   0x4   :  { %8 = vsyncpa [#allocation3], 0  ;;  %s77_s18 = smov [#allocation2]  }
   0x5   :  { %v31_v4 = vadd.f32 %v51_v2, %v23_v3  ;;  %s42_s19 = sshll.u32 %s77_s18, 4  ;;  %s43_s19 = int_to_ptr.vmem [resolvable:$true] %s42_s19 }
   0x6   :  { %s53_s20 = scalar_lea.vmem %s43_s19, 128  ;;  %p58_p1 = scmp.lt.s32.totalorder %s43_s19, %s43_s19 }
   0x7   :  { %vm32_vm0 = vcmp.gt.f32.partialorder %v31_v4, 0.0  ;;  %v33_v5 = vmul.f32 0.2, %v31_v4  ;;  %p54_p0 = scmp.ne.s32.totalorder %s43_s19, %s53_s20  ;;  %p59_p2 = scmp.lt.s32.totalorder %s53_s20, %s53_s20 }
   0x9   :  { %v34_v6 = vsel %vm32_vm0, %v31_v4, %v33_v5  ;;  %p60_p3 = por %p59_p2, %p58_p1 }
   0xa   :  { %35 = vst [vmem:[#allocation2] sm:$0xff] %v34_v6 }
   0xb   :  { %p61_p4 = pnand %p60_p3, %p54_p0 }
   0xd   :  { %64 = shalt.err (!%p61_p4)
}
   0xe   :  { %s65_s2 = scalar_lea.hbm %s122_s3, 128 }
   0xf   :  { %p66_p5 = scmp.ne.s32.totalorder %s122_s3, %s65_s2  ;;  %p69_p6 = scmp.lt.u32.totalorder %s65_s2, %s122_s3 }
  0x11   :  { %p71_p7 = pnand %p69_p6, %p66_p5 }
  0x13   :  { %74 = shalt.err (!%p71_p7)
}
  0x14   :  { %45 = dma.vmem_to_hbm [thread:$0]  %s43_s19, 128, %s122_s3, [#allocation3]  }
  0x15   :  { %75 = dma.done.wait [#allocation3], 128  }
  0x16   :  { %76 = vsyncadd [#allocation3], 4294967168 }
  0x17   :  { %49 = vsyncpa [#allocation3], 1 }

// kernel: stage1_d_forward.12
= control target key start
LH: loop header
LB: loop body
LE: loop exit
PB: predicated region body
PF: predicated region fallthrough
CT: control target
= control target key end

     0   :  { %vm235_vm0 = vcmask 1040384   ;;  %vm237_vm1 = vcmask 1041408   ;;  %s612_s1 = inlined_call_operand.vmem [shape: f32[512,128], index: 1, kind: input, shape index: {}]   ;;  %s613_s0 = inlined_call_operand.vmem [shape: f32[8,512], index: 0, kind: input, shape index: {}]   ;;  %s614_s2 = inlined_call_operand.vmem [shape: f32[8,128], index: 2, kind: output, shape index: {0}]   ;;  %s615_s3 = inlined_call_operand.vmem [shape: f32[1,8,128], index: 3, kind: output, shape index: {1}]  }
   0x1   :  { %v33_v0 = vld [vmem:[%s612_s1 + $0x80] sm:$0xff]  ;;  %v34_v1 = vld [vmem:[%s612_s1 + $0x88] sm:$0xff]  ;;  %v35_v11 = vld [vmem:[%s612_s1 + $0x90] sm:$0xff] }
   0x2   :  { %v65_v2 = vld [vmem:[%s612_s1 + $0x180] sm:$0xff]  ;;  %v318_v3 = vpack.c.bf16 %v34_v1, %v33_v0  ;;  %v66_v4 = vld [vmem:[%s612_s1 + $0x188] sm:$0xff]  ;;  %v36_v13 = vld [vmem:[%s612_s1 + $0x98] sm:$0xff] }
   0x3   :  { %v17_v5 = vld [vmem:[%s612_s1] sm:$0xff]  ;;  %v18_v6 = vld [vmem:[%s612_s1 + $0x8] sm:$0xff]  ;;  %v350_v7 = vpack.c.bf16 %v66_v4, %v65_v2  ;;  %v67_v14 = vld [vmem:[%s612_s1 + $0x190] sm:$0xff]  ;;  %v322_v16 = vpack.c.bf16 %v36_v13, %v35_v11 }
   0x4   :  { %v320_v8 = vpack.c.bf16 %v18_v6, %v17_v5  ;;  %v49_v9 = vld [vmem:[%s612_s1 + $0x100] sm:$0xff]  ;;  %v50_v10 = vld [vmem:[%s612_s1 + $0x108] sm:$0xff]  ;;  %319 = vmatprep.subr.bf16.mxu0 %v318_v3  ;;  %v68_v15 = vld [vmem:[%s612_s1 + $0x198] sm:$0xff] }
   0x5   :  { %v352_v12 = vpack.c.bf16 %v50_v10, %v49_v9  ;;  %351 = vmatprep.subr.bf16.mxu1 %v350_v7  ;;  %v354_v17 = vpack.c.bf16 %v68_v15, %v67_v14  ;;  %v19_v18 = vld [vmem:[%s612_s1 + $0x10] sm:$0xff]  ;;  %v20_v19 = vld [vmem:[%s612_s1 + $0x18] sm:$0xff]  ;;  %v37_v23 = vld [vmem:[%s612_s1 + $0xa0] sm:$0xff] }
   0x6   :  { %321 = vmatpush3.bf16.msra.mxu0 %v320_v8  ;;  %v51_v20 = vld [vmem:[%s612_s1 + $0x110] sm:$0xff]  ;;  %v324_v21 = vpack.c.bf16 %v20_v19, %v19_v18  ;;  %v52_v22 = vld [vmem:[%s612_s1 + $0x118] sm:$0xff]  ;;  %v38_v24 = vld [vmem:[%s612_s1 + $0xa8] sm:$0xff] }
   0x7   :  { %353 = vmatpush3.bf16.msra.mxu1 %v352_v12  ;;  %323 = vmatprep.subr.bf16.mxu0 %v322_v16  ;;  %v356_v25 = vpack.c.bf16 %v52_v22, %v51_v20  ;;  %v326_v26 = vpack.c.bf16 %v38_v24, %v37_v23  ;;  %v69_v27 = vld [vmem:[%s612_s1 + $0x1a0] sm:$0xff]  ;;  %v70_v28 = vld [vmem:[%s612_s1 + $0x1a8] sm:$0xff]  ;;  %v39_v35 = vld [vmem:[%s612_s1 + $0xb0] sm:$0xff] }
   0x8   :  { %355 = vmatprep.subr.bf16.mxu1 %v354_v17  ;;  %v21_v29 = vld [vmem:[%s612_s1 + $0x20] sm:$0xff]  ;;  %v358_v30 = vpack.c.bf16 %v70_v28, %v69_v27  ;;  %v22_v31 = vld [vmem:[%s612_s1 + $0x28] sm:$0xff]  ;;  %v40_v36 = vld [vmem:[%s612_s1 + $0xb8] sm:$0xff] }
   0x9   :  { %v53_v32 = vld [vmem:[%s612_s1 + $0x120] sm:$0xff]  ;;  %v54_v33 = vld [vmem:[%s612_s1 + $0x128] sm:$0xff]  ;;  %v328_v34 = vpack.c.bf16 %v22_v31, %v21_v29  ;;  %v71_v37 = vld [vmem:[%s612_s1 + $0x1b0] sm:$0xff]  ;;  %v330_v39 = vpack.c.bf16 %v40_v36, %v39_v35 }
   0xa   :  { %325 = vmatpush3.bf16.msra.mxu0 %v324_v21  ;;  %v360_v38 = vpack.c.bf16 %v54_v33, %v53_v32  ;;  %v72_v40 = vld [vmem:[%s612_s1 + $0x1b8] sm:$0xff]  ;;  %v23_v41 = vld [vmem:[%s612_s1 + $0x30] sm:$0xff]  ;;  %v41_v46 = vld [vmem:[%s612_s1 + $0xc0] sm:$0xff] }
   0xb   :  { %357 = vmatpush3.bf16.msra.mxu1 %v356_v25  ;;  %327 = vmatprep.subr.bf16.mxu0 %v326_v26  ;;  %v24_v42 = vld [vmem:[%s612_s1 + $0x38] sm:$0xff]  ;;  %v362_v43 = vpack.c.bf16 %v72_v40, %v71_v37  ;;  %v55_v44 = vld [vmem:[%s612_s1 + $0x130] sm:$0xff]  ;;  %v42_v47 = vld [vmem:[%s612_s1 + $0xc8] sm:$0xff] }
   0xc   :  { %359 = vmatprep.subr.bf16.mxu1 %v358_v30  ;;  %v56_v45 = vld [vmem:[%s612_s1 + $0x138] sm:$0xff]  ;;  %v73_v48 = vld [vmem:[%s612_s1 + $0x1c0] sm:$0xff]  ;;  %v74_v49 = vld [vmem:[%s612_s1 + $0x1c8] sm:$0xff]  ;;  %v332_v50 = vpack.c.bf16 %v24_v42, %v23_v41  ;;  %v334_v52 = vpack.c.bf16 %v42_v47, %v41_v46 }
   0xd   :  { %v364_v51 = vpack.c.bf16 %v56_v45, %v55_v44  ;;  %v25_v53 = vld [vmem:[%s612_s1 + $0x40] sm:$0xff]  ;;  %v26_v54 = vld [vmem:[%s612_s1 + $0x48] sm:$0xff]  ;;  %v366_v56 = vpack.c.bf16 %v74_v49, %v73_v48  ;;  %v43_v58 = vld [vmem:[%s612_s1 + $0xd0] sm:$0xff] }
   0xe   :  { %329 = vmatpush3.bf16.msra.mxu0 %v328_v34  ;;  %v57_v55 = vld [vmem:[%s612_s1 + $0x140] sm:$0xff]  ;;  %v58_v57 = vld [vmem:[%s612_s1 + $0x148] sm:$0xff]  ;;  %v44_v59 = vld [vmem:[%s612_s1 + $0xd8] sm:$0xff]  ;;  %v336_v62 = vpack.c.bf16 %v26_v54, %v25_v53 }
   0xf   :  { %361 = vmatpush3.bf16.msra.mxu1 %v360_v38  ;;  %331 = vmatprep.subr.bf16.mxu0 %v330_v39  ;;  %v75_v60 = vld [vmem:[%s612_s1 + $0x1d0] sm:$0xff]  ;;  %v76_v61 = vld [vmem:[%s612_s1 + $0x1d8] sm:$0xff]  ;;  %v368_v63 = vpack.c.bf16 %v58_v57, %v57_v55  ;;  %v338_v0 = vpack.c.bf16 %v44_v59, %v43_v58  ;;  %v45_v6 = vld [vmem:[%s612_s1 + $0xe0] sm:$0xff] }
  0x10   :  { %363 = vmatprep.subr.bf16.mxu1 %v362_v43  ;;  %v27_v1 = vld [vmem:[%s612_s1 + $0x50] sm:$0xff]  ;;  %v28_v2 = vld [vmem:[%s612_s1 + $0x58] sm:$0xff]  ;;  %v370_v4 = vpack.c.bf16 %v76_v61, %v75_v60  ;;  %v46_v7 = vld [vmem:[%s612_s1 + $0xe8] sm:$0xff] }
  0x11   :  { %v59_v3 = vld [vmem:[%s612_s1 + $0x150] sm:$0xff]  ;;  %v60_v5 = vld [vmem:[%s612_s1 + $0x158] sm:$0xff]  ;;  %v77_v8 = vld [vmem:[%s612_s1 + $0x1e0] sm:$0xff]  ;;  %v340_v10 = vpack.c.bf16 %v28_v2, %v27_v1  ;;  %v342_v14 = vpack.c.bf16 %v46_v7, %v45_v6 }
  0x12   :  { %333 = vmatpush3.bf16.msra.mxu0 %v332_v50  ;;  %v78_v9 = vld [vmem:[%s612_s1 + $0x1e8] sm:$0xff]  ;;  %v29_v11 = vld [vmem:[%s612_s1 + $0x60] sm:$0xff]  ;;  %v372_v13 = vpack.c.bf16 %v60_v5, %v59_v3  ;;  %v16_v17 = vld [vmem:[%s613_s0 + $0x18] sm:$0xff] }
  0x13   :  { %365 = vmatpush3.bf16.msra.mxu1 %v364_v51  ;;  %335 = vmatprep.subr.bf16.mxu0 %v334_v52  ;;  %v30_v12 = vld [vmem:[%s612_s1 + $0x68] sm:$0xff]  ;;  %v61_v15 = vld [vmem:[%s612_s1 + $0x160] sm:$0xff]  ;;  %v374_v18 = vpack.c.bf16 %v78_v9, %v77_v8  ;;  %v47_v20 = vld [vmem:[%s612_s1 + $0xf0] sm:$0xff] }
  0x14   :  { %367 = vmatprep.subr.bf16.mxu1 %v366_v56  ;;  %v14_v16 = vld [vmem:[%s613_s0 + $0x8] sm:$0xff]  ;;  %v48_v21 = vld [vmem:[%s612_s1 + $0xf8] sm:$0xff]  ;;  %v79_v22 = vld [vmem:[%s612_s1 + $0x1f0] sm:$0xff]  ;;  %215 = vmatprep.mubr.f32.mxu1 %v16_v17  ;;  %v344_v24 = vpack.c.bf16 %v30_v12, %v29_v11 }
  0x15   :  { %v62_v19 = vld [vmem:[%s612_s1 + $0x168] sm:$0xff]  ;;  %145 = vmatprep.mubr.f32.mxu0 %v14_v16  ;;  %v80_v23 = vld [vmem:[%s612_s1 + $0x1f8] sm:$0xff]  ;;  %v346_v26 = vpack.c.bf16 %v48_v21, %v47_v20  ;;  %v31_v27 = vld [vmem:[%s612_s1 + $0x70] sm:$0xff] }
  0x16   :  { %337 = vmatpush3.bf16.msra.mxu0 %v336_v62  ;;  %v376_v25 = vpack.c.bf16 %v62_v19, %v61_v15  ;;  %v32_v28 = vld [vmem:[%s612_s1 + $0x78] sm:$0xff]  ;;  %v378_v29 = vpack.c.bf16 %v80_v23, %v79_v22  ;;  %v63_v30 = vld [vmem:[%s612_s1 + $0x170] sm:$0xff]  ;;  %v13_v34 = vld [vmem:[%s613_s0] sm:$0xff] }
  0x17   :  { %369 = vmatpush3.bf16.msra.mxu1 %v368_v63  ;;  %339 = vmatprep.subr.bf16.mxu0 %v338_v0  ;;  %v64_v31 = vld [vmem:[%s612_s1 + $0x178] sm:$0xff]  ;;  %v348_v32 = vpack.c.bf16 %v32_v28, %v31_v27  ;;  %v15_v35 = vld [vmem:[%s613_s0 + $0x10] sm:$0xff] }
  0x18   :  { %371 = vmatprep.subr.bf16.mxu1 %v370_v4  ;;  %v380_v33 = vpack.c.bf16 %v64_v31, %v63_v30 }
  0x1a   :  { %341 = vmatpush3.bf16.msra.mxu0 %v340_v10 }
  0x1b   :  { %373 = vmatpush3.bf16.msra.mxu1 %v372_v13  ;;  %343 = vmatprep.subr.bf16.mxu0 %v342_v14 }
  0x1c   :  { %375 = vmatprep.subr.bf16.mxu1 %v374_v18 }
  0x1e   :  { %345 = vmatpush3.bf16.msra.mxu0 %v344_v24 }
  0x1f   :  { %377 = vmatpush3.bf16.msra.mxu1 %v376_v25  ;;  %347 = vmatprep.subr.bf16.mxu0 %v346_v26 }
  0x20   :  { %379 = vmatprep.subr.bf16.mxu1 %v378_v29 }
  0x22   :  { %349 = vmatpush3.bf16.msra.mxu0 %v348_v32 }
  0x23   :  { %381 = vmatpush3.bf16.msra.mxu1 %v380_v33 }
  0x25   :  { %146 = vmatmul.mubr.f32.vlgmr.msra.gmra.mrb[0].mxu0 %v13_v34 }
  0x26   :  { %216 = vmatmul.mubr.f32.vlgmr.msra.gmra.mrb[0].mxu1 %v15_v35 }
  0xf8   :  { %v280_v36 = vpop.f32.mrb[0].mxu0 }
  0xf9   :  { %v315_v37 = vpop.f32.mrb[0].mxu1  ;;  %v281_v38 = vpop.f32.mrb[1].mxu0 }
  0xfa   :  { %v282_v39 = vadd.f32 %v281_v38, %v280_v36  ;;  %v316_v40 = vpop.f32.mrb[1].mxu1 }
  0xfb   :  { %v317_v41 = vadd.f32 %v316_v40, %v315_v37 }
  0xfd   :  { %v218_v42 = vadd.f32 %v317_v41, %v282_v39 }
  0xff   :  { %221 = vst [vmem:[%s614_s2] sm:$0xff] %v218_v42  ;;  %v222_v43 = vrot.slane %v218_v42, 4  ;;  %v228_v44 = vmul.f32 %v218_v42, %v218_v42 }
 0x101   :  { %v223_v45 = vadd.f32 %v222_v43, %v218_v42  ;;  %v229_v46 = vrot.slane %v228_v44, 4 }
 0x103   :  { %v224_v47 = vrot.slane %v223_v45, 2  ;;  %v230_v48 = vadd.f32 %v229_v46, %v228_v44 }
 0x105   :  { %v225_v49 = vadd.f32 %v224_v47, %v223_v45  ;;  %v231_v50 = vrot.slane %v230_v48, 2 }
 0x107   :  { %v226_v51 = vrot.slane %v225_v49, 1  ;;  %v232_v52 = vadd.f32 %v231_v50, %v230_v48 }
 0x109   :  { %v233_v53 = vrot.slane %v232_v52, 1  ;;  %v227_v54 = vadd.f32 %v226_v51, %v225_v49 }
 0x10b   :  { %v234_v55 = vadd.f32 %v233_v53, %v232_v52 }
 0x10d   :  { %v236_v56 = vsel %vm235_vm0, %v227_v54, %v234_v55 }
 0x10e   :  { %v238_v57 = vsel %vm237_vm1, %v236_v56, 0.0 }
 0x10f   :  { %239 = vst [vmem:[%s615_s3] sm:$0xff] %v238_v57 }

</bundles_post_ra>
